<compile_context>
chip_gen: v7x
topology: tpu7x:2x2x1
jax: 0.10.0
libtpu: 0.0.40
codegen_flags: <defaults>
</compile_context>

<pallas_src>
import functools

import jax
import jax.numpy as jnp
from jax.experimental import pallas as pl
from jax.experimental.pallas import tpu as pltpu


# ----------------------------------------------------------------------------
# Block1 input projection (hoisted):  gx1[t, :, b*N:(b+1)*N] =
#     sum_k W1x_k^T ( x_low[b,t] @ (P @ T_k(L)) )      -- unpool folded into PL
# Fully parallel over t (megacore-friendly), all batches handled per step.
# ----------------------------------------------------------------------------
def input_proj_pool_kernel(x_ref, plw_ref, w_ref, gx_ref, *,
                           batch, n_verts, cheb_k):
    B, N, K = batch, n_verts, cheb_k
    plw = plw_ref[...]                                    # [Nlow, K*N] bf16
    wk = [w_ref[k] for k in range(K)]                     # each [4H, Cin] bf16
    for b in range(B):
        xw = jnp.dot(x_ref[b, 0].astype(jnp.bfloat16), plw,
                     preferred_element_type=jnp.float32)  # [Cin, K*N] f32
        acc = jnp.dot(wk[0], xw[:, 0:N].astype(jnp.bfloat16),
                      preferred_element_type=jnp.float32)
        for k in range(1, K):
            acc += jnp.dot(wk[k],
                           xw[:, k * N:(k + 1) * N].astype(jnp.bfloat16),
                           preferred_element_type=jnp.float32)
        gx_ref[0, :, b * N:(b + 1) * N] = acc             # lane-dense write


def input_proj_pool(x_low, pl_wide, w_x):
    """x_low: [B, T, Cin, Nlow] -> gx1: [T, 4H, B*N] f32."""
    B, T, Cin, Nlow = x_low.shape
    K, H4, _ = w_x.shape
    N = pl_wide.shape[1] // K
    kernel = functools.partial(input_proj_pool_kernel,
                               batch=B, n_verts=N, cheb_k=K)
    return pl.pallas_call(
        kernel,
        out_shape=jax.ShapeDtypeStruct((T, H4, B * N), jnp.float32),
        grid_spec=pltpu.PrefetchScalarGridSpec(
            num_scalar_prefetch=0,
            grid=(T,),
            in_specs=[
                pl.BlockSpec((B, 1, Cin, Nlow), lambda t: (0, t, 0, 0)),
                pl.BlockSpec(pl_wide.shape, lambda t: (0, 0)),
                pl.BlockSpec(w_x.shape, lambda t: (0, 0, 0)),
            ],
            out_specs=pl.BlockSpec((1, H4, B * N), lambda t: (t, 0, 0)),
        ),
        compiler_params=pltpu.CompilerParams(
            dimension_semantics=("parallel",)),
    )(x_low, pl_wide, w_x)


# ----------------------------------------------------------------------------
# Block2 input projection (hoisted): fused BN1(batch stats)+ReLU on block1's
# hidden state, in-VMEM channel concat with the skip tensor, full Chebyshev
# input projection.  Fully parallel over t.
# ----------------------------------------------------------------------------
def input_proj_bn_concat_kernel(h1_ref, cd_ref, sc_ref, sh_ref, lap_ref,
                                w_ref, gx_ref, *, batch, n_verts, cheb_k):
    B, N, K = batch, n_verts, cheb_k
    lap = lap_ref[...]
    scale = sc_ref[...]
    shift = sh_ref[...]
    wk = [w_ref[k] for k in range(K)]                     # each [4H, H+Cin] bf16
    for b in range(B):
        # fused BatchNorm1 (batch stats) + ReLU on the block1 hidden state
        y1 = jnp.maximum(h1_ref[b, 0].astype(jnp.float32) * scale + shift, 0.0)
        # channel concat with the encoder skip tensor (8-row slab first ->
        # sublane-aligned, no relayout), kept in VMEM only.
        z0 = jnp.concatenate([y1, cd_ref[b, 0]], axis=0)  # [H+Cin, N] f32
        z_bf = z0.astype(jnp.bfloat16)
        acc = jnp.dot(wk[0], z_bf, preferred_element_type=jnp.float32)
        prev2, prev1 = z0, None                           # T_{k-2}, T_{k-1} (f32)
        for k in range(1, K):
            cur = jnp.dot(z_bf, lap, preferred_element_type=jnp.float32)
            if k > 1:
                cur = 2.0 * cur - prev2
                prev2 = prev1
            prev1 = cur
            z_bf = cur.astype(jnp.bfloat16)               # one cast per term
            acc += jnp.dot(wk[k], z_bf, preferred_element_type=jnp.float32)
        gx_ref[0, :, b * N:(b + 1) * N] = acc


def input_proj_bn_concat(h1, concat_data, scale1, shift1, lap, w_in):
    B, T, H1, N = h1.shape
    Cin = concat_data.shape[2]
    K, H4, _ = w_in.shape
    kernel = functools.partial(input_proj_bn_concat_kernel,
                               batch=B, n_verts=N, cheb_k=K)
    return pl.pallas_call(
        kernel,
        out_shape=jax.ShapeDtypeStruct((T, H4, B * N), jnp.float32),
        grid_spec=pltpu.PrefetchScalarGridSpec(
            num_scalar_prefetch=0,
            grid=(T,),
            in_specs=[
                pl.BlockSpec((B, 1, H1, N), lambda t: (0, t, 0, 0)),
                pl.BlockSpec((B, 1, Cin, N), lambda t: (0, t, 0, 0)),
                pl.BlockSpec((H1, 1), lambda t: (0, 0)),
                pl.BlockSpec((H1, 1), lambda t: (0, 0)),
                pl.BlockSpec((N, N), lambda t: (0, 0)),
                pl.BlockSpec(w_in.shape, lambda t: (0, 0, 0)),
            ],
            out_specs=pl.BlockSpec((1, H4, B * N), lambda t: (t, 0, 0)),
        ),
        compiler_params=pltpu.CompilerParams(
            dimension_semantics=("parallel",)),
    )(h1, concat_data, scale1, shift1, lap, w_in)


# ----------------------------------------------------------------------------
# Recurrent ConvLSTM kernel (shared by both blocks): grid=(T,), batch folded
# into the lane axis; only the h-half of the ChebConv runs in the serial loop.
# ----------------------------------------------------------------------------
def convlstm_recurrent_kernel(gx_ref, lap_ref, w_ref, b_ref,
                              h_out_ref, stats_ref,
                              h_sc, c_sc, stat_sc, basis_sc,
                              *, batch, hidden, n_verts, cheb_k):
    B, H, N, K = batch, hidden, n_verts, cheb_k
    t = pl.program_id(0)

    @pl.when(t == 0)
    def _():
        h_sc[...] = jnp.zeros_like(h_sc)
        c_sc[...] = jnp.zeros_like(c_sc)
        stat_sc[...] = jnp.zeros_like(stat_sc)

    lap = lap_ref[...]

    # Chebyshev basis of h_{t-1}: one bf16 cast per term, written into
    # 8-sublane-aligned slabs of the basis scratch (no concats, no relayouts).
    h_prev = h_sc[...]                                    # [H, B*N] f32
    basis_sc[0:H] = h_prev.astype(jnp.bfloat16)
    for b in range(B):
        prev2 = h_prev[:, b * N:(b + 1) * N]              # T_{k-2}  (f32)
        prev1 = None                                      # T_{k-1}  (f32)
        prev_bf = basis_sc[0:H, b * N:(b + 1) * N]        # T_{k-1}  (bf16, once-cast)
        for k in range(1, K):
            cur = jnp.dot(prev_bf, lap, preferred_element_type=jnp.float32)
            if k > 1:
                cur = 2.0 * cur - prev2
                prev2 = prev1
            prev1 = cur
            prev_bf = cur.astype(jnp.bfloat16)
            basis_sc[k * H:(k + 1) * H, b * N:(b + 1) * N] = prev_bf

    # Single fused gate contraction over all K terms with batch on the lanes,
    # plus the hoisted input-side gates gx_t and the shared bias.
    gates = (jnp.dot(w_ref[...], basis_sc[...],
                     preferred_element_type=jnp.float32)
             + gx_ref[0] + b_ref[...])                    # [4H, B*N] f32

    sig = jax.nn.sigmoid(gates[:3 * H])                   # i, f, o
    i, f, o = sig[:H], sig[H:2 * H], sig[2 * H:3 * H]
    g = jnp.tanh(gates[3 * H:])

    c_new = f * c_sc[...] + i * g
    h_new = o * jnp.tanh(c_new)
    c_sc[...] = c_new
    h_sc[...] = h_new

    # Per-channel BN statistics: one stacked cross-lane reduction per step.
    stat_sc[...] += jnp.sum(jnp.concatenate([h_new, h_new * h_new], axis=0),
                            axis=1, keepdims=True)

    # Lane-dense hidden-state writeback (bf16 inter-block HBM traffic).
    for b in range(B):
        h_out_ref[b, 0] = h_new[:, b * N:(b + 1) * N].astype(h_out_ref.dtype)

    @pl.when(t == pl.num_programs(0) - 1)
    def _():
        stats_ref[...] = stat_sc[...]


def convlstm_recurrent(gx, lap, w_h, bias, *, batch, n_verts,
                       out_dtype=jnp.bfloat16):
    """gx: [T, 4H, B*N] -> (h: [B, T, H, N] bf16, stats: [2H, 1] f32)."""
    T, H4, _ = gx.shape
    H = H4 // 4
    K = w_h.shape[1] // H
    B, N = batch, n_verts
    kernel = functools.partial(convlstm_recurrent_kernel,
                               batch=B, hidden=H, n_verts=N, cheb_k=K)
    return pl.pallas_call(
        kernel,
        out_shape=(jax.ShapeDtypeStruct((B, T, H, N), out_dtype),
                   jax.ShapeDtypeStruct((2 * H, 1), jnp.float32)),
        grid_spec=pltpu.PrefetchScalarGridSpec(
            num_scalar_prefetch=0,
            grid=(T,),
            in_specs=[
                pl.BlockSpec((1, H4, B * N), lambda t: (t, 0, 0)),
                pl.BlockSpec((N, N), lambda t: (0, 0)),
                pl.BlockSpec(w_h.shape, lambda t: (0, 0)),
                pl.BlockSpec(bias.shape, lambda t: (0, 0)),
            ],
            out_specs=[
                pl.BlockSpec((B, 1, H, N), lambda t: (0, t, 0, 0)),
                pl.BlockSpec((2 * H, 1), lambda t: (0, 0)),
            ],
            scratch_shapes=[
                pltpu.VMEM((H, B * N), jnp.float32),        # h_{t-1}
                pltpu.VMEM((H, B * N), jnp.float32),        # c_{t-1}
                pltpu.VMEM((2 * H, 1), jnp.float32),        # BN sum / sumsq
                pltpu.VMEM((K * H, B * N), jnp.bfloat16),   # Chebyshev basis of h
            ],
        ),
        # Serial recurrence: no parallel grid axis by construction.
        compiler_params=pltpu.CompilerParams(
            dimension_semantics=("arbitrary",)),
    )(gx, lap, w_h, bias)


# ----------------------------------------------------------------------------
# Final BatchNorm + ReLU: one (1, T, H, N) block per batch (T*H rows / block).
# ----------------------------------------------------------------------------
def bn_relu_kernel(h_ref, sc_ref, sh_ref, o_ref):
    scale = sc_ref[...][None]                      # [1, H, 1]
    shift = sh_ref[...][None]
    o_ref[0] = jnp.maximum(h_ref[0].astype(jnp.float32) * scale + shift, 0.0)


def bn_relu(h, scale, shift):
    B, T, H, N = h.shape
    return pl.pallas_call(
        bn_relu_kernel,
        out_shape=jax.ShapeDtypeStruct((B, T, H, N), jnp.float32),
        grid_spec=pltpu.PrefetchScalarGridSpec(
            num_scalar_prefetch=0,
            grid=(B,),
            in_specs=[
                pl.BlockSpec((1, T, H, N), lambda b: (b, 0, 0, 0)),
                pl.BlockSpec((H, 1), lambda b: (0, 0)),
                pl.BlockSpec((H, 1), lambda b: (0, 0)),
            ],
            out_specs=pl.BlockSpec((1, T, H, N), lambda b: (b, 0, 0, 0)),
        ),
        compiler_params=pltpu.CompilerParams(
            dimension_semantics=("parallel",)),
    )(h, scale, shift)


def bn_fold_stats(stats, count, gamma, beta, eps=1e-5):
    """Fold per-channel (sum, sumsq) into affine scale/shift [H, 1]."""
    H = gamma.shape[0]
    mean = stats[:H] / count
    var = jnp.maximum(stats[H:] / count - mean * mean, 0.0)   # biased (torch norm)
    scale = gamma * jax.lax.rsqrt(var + eps)
    shift = beta - mean * scale
    return scale, shift


# ----------------------------------------------------------------------------
# Parameter / Laplacian construction (deterministic, synthetic).
# ----------------------------------------------------------------------------
def build_laplacian(n):
    # Ring graph, symmetric-normalized Laplacian, rescaled (2L/lmax - I,
    # lmax = 2).  Symmetric, which the right-multiplication relies on.
    idx = jnp.arange(n)
    adj = (jnp.zeros((n, n), jnp.float32)
           .at[idx, (idx + 1) % n].set(1.0)
           .at[idx, (idx - 1) % n].set(1.0))
    deg = jnp.sum(adj, axis=1)
    lap = jnp.eye(n, dtype=jnp.float32) - adj / jnp.sqrt(deg[:, None] * deg[None, :])
    return lap - jnp.eye(n, dtype=jnp.float32)


def build_unpool_matrix(n_low, n):
    # Nearest-neighbour x4 replication matrix: x_rep = x_low @ P.
    return (jnp.arange(n)[None, :] // (n // n_low)
            == jnp.arange(n_low)[:, None]).astype(jnp.float32)


def build_cheb_unpool(p_mat, lap, k):
    """PL_k = P @ T_k(L), concatenated along columns -> [Nlow, K*N]."""
    n = lap.shape[0]
    terms = [jnp.eye(n, dtype=jnp.float32), lap]
    for _ in range(2, k):
        terms.append(2.0 * terms[-1] @ lap - terms[-2])
    return jnp.concatenate([p_mat @ terms[i] for i in range(k)], axis=1)


def make_chebconv_params(key, c_total, hidden, k):
    # Single fused ChebConv weight [K, C_total, 4H] (gate order i,f,o,g) and
    # gate bias, exactly as the reference ConvLSTM cell's ChebConv.
    kw, kb = jax.random.split(key)
    scale = float(k * c_total) ** -0.5
    w = scale * jax.random.normal(kw, (k, c_total, 4 * hidden), jnp.float32)
    bias = 0.1 * jax.random.normal(kb, (4 * hidden, 1), jnp.float32)
    return w, bias


def split_chebconv_weight(w, c_in, hidden):
    """[K, C_total, 4H] -> (input half [K, 4H, Cin], fused h half [4H, K*H])."""
    k = w.shape[0]
    w_in = jnp.transpose(w[:, :c_in, :], (0, 2, 1)).astype(jnp.bfloat16)
    w_h = (jnp.transpose(w[:, c_in:, :], (2, 0, 1))
           .reshape(4 * hidden, k * hidden).astype(jnp.bfloat16))
    return w_in, w_h


# ----------------------------------------------------------------------------
# Full module forward.
# ----------------------------------------------------------------------------
def convlstm_spherical_cheb_bn_pool_concat(x, concat_data, params):
    """x: [B, T, Cin, N_low]; concat_data: [B, T, Cin, N], N = 4*N_low.

    Returns [B, T, Cout, N] (PyTorch layout)."""
    B, T, _, _ = x.shape
    N = concat_data.shape[-1]
    count = float(B * T * N)

    # --- block1: unpool + ConvLSTM (input projection hoisted off the loop) ---
    gx1 = input_proj_pool(x, params['pl_wide'], params['w1x'])
    h1, stats1 = convlstm_recurrent(gx1, params['lap'], params['w1h'],
                                    params['b1'], batch=B, n_verts=N)
    scale1, shift1 = bn_fold_stats(stats1, count,
                                   params['bn1_gamma'], params['bn1_beta'])

    # --- BN1+ReLU + skip concat folded into block2's parallel projection ---
    gx2 = input_proj_bn_concat(h1, concat_data, scale1, shift1,
                               params['lap'], params['w2in'])
    h2, stats2 = convlstm_recurrent(gx2, params['lap'], params['w2h'],
                                    params['b2'], batch=B, n_verts=N)
    scale2, shift2 = bn_fold_stats(stats2, count,
                                   params['bn2_gamma'], params['bn2_beta'])

    # --- final BN2 + ReLU normalize pass ---
    return bn_relu(h2, scale2, shift2)


if __name__ == "__main__":
    B, T, Cin, Cout, Nlow, K = 2, 8, 4, 8, 32, 3
    N = 4 * Nlow   # 128 -> lane-dense vertex axis

    key = jax.random.PRNGKey(0)
    k_x, k_cd, k_w1, k_w2 = jax.random.split(key, 4)
    x = jax.random.normal(k_x, (B, T, Cin, Nlow), jnp.float32)
    concat_data = jax.random.normal(k_cd, (B, T, Cin, N), jnp.float32)

    lap = build_laplacian(N)
    p_mat = build_unpool_matrix(Nlow, N)
    # block1 ChebConv channels: [x (Cin), h (Cout)]
    w1, b1 = make_chebconv_params(k_w1, Cin + Cout, Cout, K)
    # block2 ChebConv channels: [block1 out (Cout), skip (Cin), h (Cout)]
    w2, b2 = make_chebconv_params(k_w2, Cout + Cin + Cout, Cout, K)
    w1x, w1h = split_chebconv_weight(w1, Cin, Cout)
    w2in, w2h = split_chebconv_weight(w2, Cout + Cin, Cout)

    params = {
        'lap': lap.astype(jnp.bfloat16),
        'pl_wide': build_cheb_unpool(p_mat, lap, K).astype(jnp.bfloat16),
        'w1x': w1x, 'w1h': w1h, 'b1': b1,
        'w2in': w2in, 'w2h': w2h, 'b2': b2,
        'bn1_gamma': jnp.ones((Cout, 1), jnp.float32),
        'bn1_beta': jnp.zeros((Cout, 1), jnp.float32),
        'bn2_gamma': jnp.ones((Cout, 1), jnp.float32),
        'bn2_beta': jnp.zeros((Cout, 1), jnp.float32),
    }

    out = jax.jit(convlstm_spherical_cheb_bn_pool_concat)(x, concat_data, params)
    out = jax.block_until_ready(out)
    assert out.shape == (B, T, Cout, N), out.shape
    assert bool(jnp.all(jnp.isfinite(out)))
    print("KERNEL_OK")
</pallas_src>

<mosaic_0001>
module attributes {stable_mosaic.version = 11 : i64} {
  func.func @input_proj_pool_kernel(%arg0: i32, %arg1: memref<2x1x4x32xf32, #tpu.memory_space<vmem>>, %arg2: memref<32x384xbf16, #tpu.memory_space<vmem>>, %arg3: memref<3x32x4xbf16, #tpu.memory_space<vmem>>, %arg4: memref<1x32x256xf32, #tpu.memory_space<vmem>>) attributes {dimension_semantics = [#tpu.dimension_semantics<parallel>], iteration_bounds = array<i64: 8>, scalar_prefetch = 0 : i64, scratch_operands = 0 : i64, tpu.core_type = #tpu.core_type<tc>, window_params = [{transform_indices = @transform_0, window_bounds = array<i64: 2, 1, 4, 32>}, {pipeline_mode = #tpu.pipeline_mode<synchronous>, transform_indices = @transform_1, window_bounds = array<i64: 32, 384>}, {pipeline_mode = #tpu.pipeline_mode<synchronous>, transform_indices = @transform_2, window_bounds = array<i64: 3, 32, 4>}, {transform_indices = @transform_3, window_bounds = array<i64: 1, 32, 256>}]} {
    %c0 = arith.constant 0 : index
    %c0_0 = arith.constant 0 : index
    %0 = vector.load %arg2[%c0, %c0_0] : memref<32x384xbf16, #tpu.memory_space<vmem>>, vector<32x384xbf16>
    %c0_1 = arith.constant 0 : index
    %c0_2 = arith.constant 0 : index
    %c0_3 = arith.constant 0 : index
    %1 = vector.load %arg3[%c0_1, %c0_2, %c0_3] : memref<3x32x4xbf16, #tpu.memory_space<vmem>>, vector<1x32x4xbf16>
    %2 = vector.shape_cast %1 : vector<1x32x4xbf16> to vector<32x4xbf16>
    %c1 = arith.constant 1 : index
    %c0_4 = arith.constant 0 : index
    %c0_5 = arith.constant 0 : index
    %3 = vector.load %arg3[%c1, %c0_4, %c0_5] : memref<3x32x4xbf16, #tpu.memory_space<vmem>>, vector<1x32x4xbf16>
    %4 = vector.shape_cast %3 : vector<1x32x4xbf16> to vector<32x4xbf16>
    %c2 = arith.constant 2 : index
    %c0_6 = arith.constant 0 : index
    %c0_7 = arith.constant 0 : index
    %5 = vector.load %arg3[%c2, %c0_6, %c0_7] : memref<3x32x4xbf16, #tpu.memory_space<vmem>>, vector<1x32x4xbf16>
    %6 = vector.shape_cast %5 : vector<1x32x4xbf16> to vector<32x4xbf16>
    %c0_8 = arith.constant 0 : index
    %c0_9 = arith.constant 0 : index
    %c0_10 = arith.constant 0 : index
    %c0_11 = arith.constant 0 : index
    %7 = vector.load %arg1[%c0_8, %c0_9, %c0_10, %c0_11] : memref<2x1x4x32xf32, #tpu.memory_space<vmem>>, vector<1x1x4x32xf32>
    %8 = vector.shape_cast %7 : vector<1x1x4x32xf32> to vector<4x32xf32>
    %9 = arith.truncf %8 : vector<4x32xf32> to vector<4x32xbf16>
    %cst = arith.constant dense<0.000000e+00> : vector<4x384xf32>
    %10 = tpu.matmul %9, %0, %cst {dimension_numbers = #tpu.dot_dimension_numbers<[1], [0], [0], [1], [0, 0, 1, 1], [], []>} : vector<4x32xbf16>, vector<32x384xbf16>, vector<4x384xf32> -> vector<4x384xf32>
    %11 = vector.extract_strided_slice %10 {offsets = [0, 0], sizes = [4, 128], strides = [1, 1]} : vector<4x384xf32> to vector<4x128xf32>
    %12 = arith.truncf %11 : vector<4x128xf32> to vector<4x128xbf16>
    %cst_12 = arith.constant dense<0.000000e+00> : vector<32x128xf32>
    %13 = tpu.matmul %2, %12, %cst_12 {dimension_numbers = #tpu.dot_dimension_numbers<[1], [0], [0], [1], [0, 0, 1, 1], [], []>} : vector<32x4xbf16>, vector<4x128xbf16>, vector<32x128xf32> -> vector<32x128xf32>
    %14 = vector.extract_strided_slice %10 {offsets = [0, 128], sizes = [4, 128], strides = [1, 1]} : vector<4x384xf32> to vector<4x128xf32>
    %15 = arith.truncf %14 : vector<4x128xf32> to vector<4x128xbf16>
    %cst_13 = arith.constant dense<0.000000e+00> : vector<32x128xf32>
    %16 = tpu.matmul %4, %15, %cst_13 {dimension_numbers = #tpu.dot_dimension_numbers<[1], [0], [0], [1], [0, 0, 1, 1], [], []>} : vector<32x4xbf16>, vector<4x128xbf16>, vector<32x128xf32> -> vector<32x128xf32>
    %17 = arith.addf %13, %16 : vector<32x128xf32>
    %18 = vector.extract_strided_slice %10 {offsets = [0, 256], sizes = [4, 128], strides = [1, 1]} : vector<4x384xf32> to vector<4x128xf32>
    %19 = arith.truncf %18 : vector<4x128xf32> to vector<4x128xbf16>
    %cst_14 = arith.constant dense<0.000000e+00> : vector<32x128xf32>
    %20 = tpu.matmul %6, %19, %cst_14 {dimension_numbers = #tpu.dot_dimension_numbers<[1], [0], [0], [1], [0, 0, 1, 1], [], []>} : vector<32x4xbf16>, vector<4x128xbf16>, vector<32x128xf32> -> vector<32x128xf32>
    %21 = arith.addf %17, %20 : vector<32x128xf32>
    %c0_15 = arith.constant 0 : index
    %c0_16 = arith.constant 0 : index
    %c0_17 = arith.constant 0 : index
    %22 = vector.load %arg4[%c0_15, %c0_16, %c0_17] : memref<1x32x256xf32, #tpu.memory_space<vmem>>, vector<1x32x128xf32>
    %23 = vector.shape_cast %22 : vector<1x32x128xf32> to vector<32x128xf32>
    %24 = vector.shape_cast %21 : vector<32x128xf32> to vector<1x32x128xf32>
    tpu.vector_store %arg4[%c0_15, %c0_16, %c0_17], %24 {strides = array<i32>} : memref<1x32x256xf32, #tpu.memory_space<vmem>>, vector<1x32x128xf32>,
    %c1_18 = arith.constant 1 : index
    %c0_19 = arith.constant 0 : index
    %c0_20 = arith.constant 0 : index
    %c0_21 = arith.constant 0 : index
    %25 = vector.load %arg1[%c1_18, %c0_19, %c0_20, %c0_21] : memref<2x1x4x32xf32, #tpu.memory_space<vmem>>, vector<1x1x4x32xf32>
    %26 = vector.shape_cast %25 : vector<1x1x4x32xf32> to vector<4x32xf32>
    %27 = arith.truncf %26 : vector<4x32xf32> to vector<4x32xbf16>
    %cst_22 = arith.constant dense<0.000000e+00> : vector<4x384xf32>
    %28 = tpu.matmul %27, %0, %cst_22 {dimension_numbers = #tpu.dot_dimension_numbers<[1], [0], [0], [1], [0, 0, 1, 1], [], []>} : vector<4x32xbf16>, vector<32x384xbf16>, vector<4x384xf32> -> vector<4x384xf32>
    %29 = vector.extract_strided_slice %28 {offsets = [0, 0], sizes = [4, 128], strides = [1, 1]} : vector<4x384xf32> to vector<4x128xf32>
    %30 = arith.truncf %29 : vector<4x128xf32> to vector<4x128xbf16>
    %cst_23 = arith.constant dense<0.000000e+00> : vector<32x128xf32>
    %31 = tpu.matmul %2, %30, %cst_23 {dimension_numbers = #tpu.dot_dimension_numbers<[1], [0], [0], [1], [0, 0, 1, 1], [], []>} : vector<32x4xbf16>, vector<4x128xbf16>, vector<32x128xf32> -> vector<32x128xf32>
    %32 = vector.extract_strided_slice %28 {offsets = [0, 128], sizes = [4, 128], strides = [1, 1]} : vector<4x384xf32> to vector<4x128xf32>
    %33 = arith.truncf %32 : vector<4x128xf32> to vector<4x128xbf16>
    %cst_24 = arith.constant dense<0.000000e+00> : vector<32x128xf32>
    %34 = tpu.matmul %4, %33, %cst_24 {dimension_numbers = #tpu.dot_dimension_numbers<[1], [0], [0], [1], [0, 0, 1, 1], [], []>} : vector<32x4xbf16>, vector<4x128xbf16>, vector<32x128xf32> -> vector<32x128xf32>
    %35 = arith.addf %31, %34 : vector<32x128xf32>
    %36 = vector.extract_strided_slice %28 {offsets = [0, 256], sizes = [4, 128], strides = [1, 1]} : vector<4x384xf32> to vector<4x128xf32>
    %37 = arith.truncf %36 : vector<4x128xf32> to vector<4x128xbf16>
    %cst_25 = arith.constant dense<0.000000e+00> : vector<32x128xf32>
    %38 = tpu.matmul %6, %37, %cst_25 {dimension_numbers = #tpu.dot_dimension_numbers<[1], [0], [0], [1], [0, 0, 1, 1], [], []>} : vector<32x4xbf16>, vector<4x128xbf16>, vector<32x128xf32> -> vector<32x128xf32>
    %39 = arith.addf %35, %38 : vector<32x128xf32>
    %c0_26 = arith.constant 0 : index
    %c0_27 = arith.constant 0 : index
    %c128 = arith.constant 128 : index
    %40 = vector.load %arg4[%c0_26, %c0_27, %c128] : memref<1x32x256xf32, #tpu.memory_space<vmem>>, vector<1x32x128xf32>
    %41 = vector.shape_cast %40 : vector<1x32x128xf32> to vector<32x128xf32>
    %42 = vector.shape_cast %39 : vector<32x128xf32> to vector<1x32x128xf32>
    tpu.vector_store %arg4[%c0_26, %c0_27, %c128], %42 {strides = array<i32>} : memref<1x32x256xf32, #tpu.memory_space<vmem>>, vector<1x32x128xf32>,
    return
  }
  func.func @transform_0(%arg0: i32) -> (i32, i32, i32, i32) {
    %c0_i32 = arith.constant 0 : i32
    %c0_i32_0 = arith.constant 0 : i32
    %c0_i32_1 = arith.constant 0 : i32
    %c0_i32_2 = arith.constant 0 : i32
    return %c0_i32, %arg0, %c0_i32_0, %c0_i32_1 : i32, i32, i32, i32
  }
  func.func @transform_1(%arg0: i32) -> (i32, i32) {
    %c0_i32 = arith.constant 0 : i32
    %c0_i32_0 = arith.constant 0 : i32
    %c0_i32_1 = arith.constant 0 : i32
    return %c0_i32, %c0_i32_0 : i32, i32
  }
  func.func @transform_2(%arg0: i32) -> (i32, i32, i32) {
    %c0_i32 = arith.constant 0 : i32
    %c0_i32_0 = arith.constant 0 : i32
    %c0_i32_1 = arith.constant 0 : i32
    %c0_i32_2 = arith.constant 0 : i32
    return %c0_i32, %c0_i32_0, %c0_i32_1 : i32, i32, i32
  }
  func.func @transform_3(%arg0: i32) -> (i32, i32, i32) {
    %c0_i32 = arith.constant 0 : i32
    %c0_i32_0 = arith.constant 0 : i32
    %c0_i32_1 = arith.constant 0 : i32
    return %arg0, %c0_i32, %c0_i32_0 : i32, i32, i32
  }
}

module attributes {stable_mosaic.version = 11 : i64} {
  func.func @convlstm_recurrent_kernel(%arg0: i32, %arg1: memref<1x32x256xf32, #tpu.memory_space<vmem>>, %arg2: memref<128x128xbf16, #tpu.memory_space<vmem>>, %arg3: memref<32x24xbf16, #tpu.memory_space<vmem>>, %arg4: memref<32x1xf32, #tpu.memory_space<vmem>>, %arg5: memref<2x1x8x128xbf16, #tpu.memory_space<vmem>>, %arg6: memref<16x1xf32, #tpu.memory_space<vmem>>, %arg7: memref<8x256xf32, #tpu.memory_space<vmem>>, %arg8: memref<8x256xf32, #tpu.memory_space<vmem>>, %arg9: memref<16x1xf32, #tpu.memory_space<vmem>>, %arg10: memref<24x256xbf16, #tpu.memory_space<vmem>>) attributes {dimension_semantics = [#tpu.dimension_semantics<arbitrary>], iteration_bounds = array<i64: 8>, scalar_prefetch = 0 : i64, scratch_operands = 4 : i64, tpu.core_type = #tpu.core_type<tc>, window_params = [{transform_indices = @transform_0, window_bounds = array<i64: 1, 32, 256>}, {pipeline_mode = #tpu.pipeline_mode<synchronous>, transform_indices = @transform_1, window_bounds = array<i64: 128, 128>}, {pipeline_mode = #tpu.pipeline_mode<synchronous>, transform_indices = @transform_2, window_bounds = array<i64: 32, 24>}, {pipeline_mode = #tpu.pipeline_mode<synchronous>, transform_indices = @transform_3, window_bounds = array<i64: 32, 1>}, {transform_indices = @transform_4, window_bounds = array<i64: 2, 1, 8, 128>}, {pipeline_mode = #tpu.pipeline_mode<synchronous>, transform_indices = @transform_5, window_bounds = array<i64: 16, 1>}]} {
    %c0_i32 = arith.constant 0 : i32
    %0 = arith.cmpi eq, %arg0, %c0_i32 : i32
    %1 = arith.extui %0 : i1 to i32
    %c0_i32_0 = arith.constant 0 : i32
    %2 = arith.cmpi ne, %1, %c0_i32_0 : i32
    scf.if %2 {
      %cst_50 = arith.constant 0.000000e+00 : f32
      %77 = vector.broadcast %cst_50 : f32 to vector<8x256xf32>
      %c0_51 = arith.constant 0 : index
      %c0_52 = arith.constant 0 : index
      %78 = vector.load %arg7[%c0_51, %c0_52] : memref<8x256xf32, #tpu.memory_space<vmem>>, vector<8x256xf32>
      tpu.vector_store %arg7[%c0_51, %c0_52], %77 {strides = array<i32>} : memref<8x256xf32, #tpu.memory_space<vmem>>, vector<8x256xf32>,
      %cst_53 = arith.constant 0.000000e+00 : f32
      %79 = vector.broadcast %cst_53 : f32 to vector<8x256xf32>
      %c0_54 = arith.constant 0 : index
      %c0_55 = arith.constant 0 : index
      %80 = vector.load %arg8[%c0_54, %c0_55] : memref<8x256xf32, #tpu.memory_space<vmem>>, vector<8x256xf32>
      tpu.vector_store %arg8[%c0_54, %c0_55], %79 {strides = array<i32>} : memref<8x256xf32, #tpu.memory_space<vmem>>, vector<8x256xf32>,
      %cst_56 = arith.constant 0.000000e+00 : f32
      %81 = vector.broadcast %cst_56 : f32 to vector<16x1xf32>
      %c0_57 = arith.constant 0 : index
      %c0_58 = arith.constant 0 : index
      %82 = vector.load %arg9[%c0_57, %c0_58] : memref<16x1xf32, #tpu.memory_space<vmem>>, vector<16x1xf32>
      tpu.vector_store %arg9[%c0_57, %c0_58], %81 {strides = array<i32>} : memref<16x1xf32, #tpu.memory_space<vmem>>, vector<16x1xf32>,
    } else {
    }
    %c0 = arith.constant 0 : index
    %c0_1 = arith.constant 0 : index
    %3 = vector.load %arg2[%c0, %c0_1] : memref<128x128xbf16, #tpu.memory_space<vmem>>, vector<128x128xbf16>
    %c0_2 = arith.constant 0 : index
    %c0_3 = arith.constant 0 : index
    %4 = vector.load %arg7[%c0_2, %c0_3] : memref<8x256xf32, #tpu.memory_space<vmem>>, vector<8x256xf32>
    %5 = arith.truncf %4 : vector<8x256xf32> to vector<8x256xbf16>
    %c0_4 = arith.constant 0 : index
    %c0_5 = arith.constant 0 : index
    %6 = vector.load %arg10[%c0_4, %c0_5] : memref<24x256xbf16, #tpu.memory_space<vmem>>, vector<8x256xbf16>
    tpu.vector_store %arg10[%c0_4, %c0_5], %5 {strides = array<i32>} : memref<24x256xbf16, #tpu.memory_space<vmem>>, vector<8x256xbf16>,
    %7 = vector.extract_strided_slice %4 {offsets = [0, 0], sizes = [8, 128], strides = [1, 1]} : vector<8x256xf32> to vector<8x128xf32>
    %c0_6 = arith.constant 0 : index
    %c0_7 = arith.constant 0 : index
    %8 = vector.load %arg10[%c0_6, %c0_7] : memref<24x256xbf16, #tpu.memory_space<vmem>>, vector<8x128xbf16>
    %cst = arith.constant dense<0.000000e+00> : vector<8x128xf32>
    %9 = tpu.matmul %8, %3, %cst {dimension_numbers = #tpu.dot_dimension_numbers<[1], [0], [0], [1], [0, 0, 1, 1], [], []>} : vector<8x128xbf16>, vector<128x128xbf16>, vector<8x128xf32> -> vector<8x128xf32>
    %10 = arith.truncf %9 : vector<8x128xf32> to vector<8x128xbf16>
    %c8 = arith.constant 8 : index
    %c0_8 = arith.constant 0 : index
    %11 = vector.load %arg10[%c8, %c0_8] : memref<24x256xbf16, #tpu.memory_space<vmem>>, vector<8x128xbf16>
    tpu.vector_store %arg10[%c8, %c0_8], %10 {strides = array<i32>} : memref<24x256xbf16, #tpu.memory_space<vmem>>, vector<8x128xbf16>,
    %cst_9 = arith.constant dense<0.000000e+00> : vector<8x128xf32>
    %12 = tpu.matmul %10, %3, %cst_9 {dimension_numbers = #tpu.dot_dimension_numbers<[1], [0], [0], [1], [0, 0, 1, 1], [], []>} : vector<8x128xbf16>, vector<128x128xbf16>, vector<8x128xf32> -> vector<8x128xf32>
    %cst_10 = arith.constant 2.000000e+00 : f32
    %13 = vector.broadcast %cst_10 : f32 to vector<8x128xf32>
    %14 = arith.mulf %13, %12 : vector<8x128xf32>
    %15 = arith.subf %14, %7 : vector<8x128xf32>
    %16 = arith.truncf %15 : vector<8x128xf32> to vector<8x128xbf16>
    %c16 = arith.constant 16 : index
    %c0_11 = arith.constant 0 : index
    %17 = vector.load %arg10[%c16, %c0_11] : memref<24x256xbf16, #tpu.memory_space<vmem>>, vector<8x128xbf16>
    tpu.vector_store %arg10[%c16, %c0_11], %16 {strides = array<i32>} : memref<24x256xbf16, #tpu.memory_space<vmem>>, vector<8x128xbf16>,
    %18 = vector.extract_strided_slice %4 {offsets = [0, 128], sizes = [8, 128], strides = [1, 1]} : vector<8x256xf32> to vector<8x128xf32>
    %c0_12 = arith.constant 0 : index
    %c128 = arith.constant 128 : index
    %19 = vector.load %arg10[%c0_12, %c128] : memref<24x256xbf16, #tpu.memory_space<vmem>>, vector<8x128xbf16>
    %cst_13 = arith.constant dense<0.000000e+00> : vector<8x128xf32>
    %20 = tpu.matmul %19, %3, %cst_13 {dimension_numbers = #tpu.dot_dimension_numbers<[1], [0], [0], [1], [0, 0, 1, 1], [], []>} : vector<8x128xbf16>, vector<128x128xbf16>, vector<8x128xf32> -> vector<8x128xf32>
    %21 = arith.truncf %20 : vector<8x128xf32> to vector<8x128xbf16>
    %c8_14 = arith.constant 8 : index
    %c128_15 = arith.constant 128 : index
    %22 = vector.load %arg10[%c8_14, %c128_15] : memref<24x256xbf16, #tpu.memory_space<vmem>>, vector<8x128xbf16>
    tpu.vector_store %arg10[%c8_14, %c128_15], %21 {strides = array<i32>} : memref<24x256xbf16, #tpu.memory_space<vmem>>, vector<8x128xbf16>,
    %cst_16 = arith.constant dense<0.000000e+00> : vector<8x128xf32>
    %23 = tpu.matmul %21, %3, %cst_16 {dimension_numbers = #tpu.dot_dimension_numbers<[1], [0], [0], [1], [0, 0, 1, 1], [], []>} : vector<8x128xbf16>, vector<128x128xbf16>, vector<8x128xf32> -> vector<8x128xf32>
    %cst_17 = arith.constant 2.000000e+00 : f32
    %24 = vector.broadcast %cst_17 : f32 to vector<8x128xf32>
    %25 = arith.mulf %24, %23 : vector<8x128xf32>
    %26 = arith.subf %25, %18 : vector<8x128xf32>
    %27 = arith.truncf %26 : vector<8x128xf32> to vector<8x128xbf16>
    %c16_18 = arith.constant 16 : index
    %c128_19 = arith.constant 128 : index
    %28 = vector.load %arg10[%c16_18, %c128_19] : memref<24x256xbf16, #tpu.memory_space<vmem>>, vector<8x128xbf16>
    tpu.vector_store %arg10[%c16_18, %c128_19], %27 {strides = array<i32>} : memref<24x256xbf16, #tpu.memory_space<vmem>>, vector<8x128xbf16>,
    %c0_20 = arith.constant 0 : index
    %c0_21 = arith.constant 0 : index
    %29 = vector.load %arg3[%c0_20, %c0_21] : memref<32x24xbf16, #tpu.memory_space<vmem>>, vector<32x24xbf16>
    %c0_22 = arith.constant 0 : index
    %c0_23 = arith.constant 0 : index
    %30 = vector.load %arg10[%c0_22, %c0_23] : memref<24x256xbf16, #tpu.memory_space<vmem>>, vector<24x256xbf16>
    %cst_24 = arith.constant dense<0.000000e+00> : vector<32x256xf32>
    %31 = tpu.matmul %29, %30, %cst_24 {dimension_numbers = #tpu.dot_dimension_numbers<[1], [0], [0], [1], [0, 0, 1, 1], [], []>} : vector<32x24xbf16>, vector<24x256xbf16>, vector<32x256xf32> -> vector<32x256xf32>
    %c0_25 = arith.constant 0 : index
    %c0_26 = arith.constant 0 : index
    %c0_27 = arith.constant 0 : index
    %32 = vector.load %arg1[%c0_25, %c0_26, %c0_27] : memref<1x32x256xf32, #tpu.memory_space<vmem>>, vector<1x32x256xf32>
    %33 = vector.shape_cast %32 : vector<1x32x256xf32> to vector<32x256xf32>
    %34 = arith.addf %31, %33 : vector<32x256xf32>
    %c0_28 = arith.constant 0 : index
    %c0_29 = arith.constant 0 : index
    %35 = vector.load %arg4[%c0_28, %c0_29] : memref<32x1xf32, #tpu.memory_space<vmem>>, vector<32x1xf32>
    %36 = vector.broadcast %35 : vector<32x1xf32> to vector<32x256xf32>
    %37 = arith.addf %34, %36 : vector<32x256xf32>
    %38 = vector.extract_strided_slice %37 {offsets = [0, 0], sizes = [24, 256], strides = [1, 1]} : vector<32x256xf32> to vector<24x256xf32>
    %39 = arith.negf %38 : vector<24x256xf32>
    %40 = math.exp %39 : vector<24x256xf32>
    %cst_30 = arith.constant 1.000000e+00 : f32
    %41 = vector.broadcast %cst_30 : f32 to vector<24x256xf32>
    %42 = arith.addf %41, %40 : vector<24x256xf32>
    %43 = arith.divf %41, %42 : vector<24x256xf32>
    %44 = vector.extract_strided_slice %43 {offsets = [0, 0], sizes = [8, 256], strides = [1, 1]} : vector<24x256xf32> to vector<8x256xf32>
    %45 = vector.extract_strided_slice %43 {offsets = [8, 0], sizes = [8, 256], strides = [1, 1]} : vector<24x256xf32> to vector<8x256xf32>
    %46 = vector.extract_strided_slice %43 {offsets = [16, 0], sizes = [8, 256], strides = [1, 1]} : vector<24x256xf32> to vector<8x256xf32>
    %47 = vector.extract_strided_slice %37 {offsets = [24, 0], sizes = [8, 256], strides = [1, 1]} : vector<32x256xf32> to vector<8x256xf32>
    %48 = math.tanh %47 : vector<8x256xf32>
    %c0_31 = arith.constant 0 : index
    %c0_32 = arith.constant 0 : index
    %49 = vector.load %arg8[%c0_31, %c0_32] : memref<8x256xf32, #tpu.memory_space<vmem>>, vector<8x256xf32>
    %50 = arith.mulf %45, %49 : vector<8x256xf32>
    %51 = arith.mulf %44, %48 : vector<8x256xf32>
    %52 = arith.addf %50, %51 : vector<8x256xf32>
    %53 = math.tanh %52 : vector<8x256xf32>
    %54 = arith.mulf %46, %53 : vector<8x256xf32>
    %c0_33 = arith.constant 0 : index
    %c0_34 = arith.constant 0 : index
    %55 = vector.load %arg8[%c0_33, %c0_34] : memref<8x256xf32, #tpu.memory_space<vmem>>, vector<8x256xf32>
    tpu.vector_store %arg8[%c0_33, %c0_34], %52 {strides = array<i32>} : memref<8x256xf32, #tpu.memory_space<vmem>>, vector<8x256xf32>,
    %c0_35 = arith.constant 0 : index
    %c0_36 = arith.constant 0 : index
    %56 = vector.load %arg7[%c0_35, %c0_36] : memref<8x256xf32, #tpu.memory_space<vmem>>, vector<8x256xf32>
    tpu.vector_store %arg7[%c0_35, %c0_36], %54 {strides = array<i32>} : memref<8x256xf32, #tpu.memory_space<vmem>>, vector<8x256xf32>,
    %c0_37 = arith.constant 0 : index
    %c0_38 = arith.constant 0 : index
    %57 = vector.load %arg9[%c0_37, %c0_38] : memref<16x1xf32, #tpu.memory_space<vmem>>, vector<16x1xf32>
    %58 = arith.mulf %54, %54 : vector<8x256xf32>
    %59 = tpu.concatenate %54, %58 in 0 : vector<8x256xf32>, vector<8x256xf32> -> vector<16x256xf32>
    %cst_39 = arith.constant dense<0.000000e+00> : vector<16xf32>
    %60 = vector.multi_reduction <add>, %59, %cst_39 [1] : vector<16x256xf32> to vector<16xf32>
    %61 = vector.shape_cast %60 : vector<16xf32> to vector<16x1xf32>
    %62 = arith.addf %57, %61 : vector<16x1xf32>
    %c0_40 = arith.constant 0 : index
    %c0_41 = arith.constant 0 : index
    %63 = vector.load %arg9[%c0_40, %c0_41] : memref<16x1xf32, #tpu.memory_space<vmem>>, vector<16x1xf32>
    tpu.vector_store %arg9[%c0_40, %c0_41], %62 {strides = array<i32>} : memref<16x1xf32, #tpu.memory_space<vmem>>, vector<16x1xf32>,
    %64 = vector.extract_strided_slice %54 {offsets = [0, 0], sizes = [8, 128], strides = [1, 1]} : vector<8x256xf32> to vector<8x128xf32>
    %65 = arith.truncf %64 : vector<8x128xf32> to vector<8x128xbf16>
    %c0_42 = arith.constant 0 : index
    %c0_43 = arith.constant 0 : index
    %c0_44 = arith.constant 0 : index
    %c0_45 = arith.constant 0 : index
    %66 = vector.load %arg5[%c0_42, %c0_43, %c0_44, %c0_45] : memref<2x1x8x128xbf16, #tpu.memory_space<vmem>>, vector<1x1x8x128xbf16>
    %67 = vector.shape_cast %66 : vector<1x1x8x128xbf16> to vector<8x128xbf16>
    %68 = vector.shape_cast %65 : vector<8x128xbf16> to vector<1x1x8x128xbf16>
    tpu.vector_store %arg5[%c0_42, %c0_43, %c0_44, %c0_45], %68 {strides = array<i32>} : memref<2x1x8x128xbf16, #tpu.memory_space<vmem>>, vector<1x1x8x128xbf16>,
    %69 = vector.extract_strided_slice %54 {offsets = [0, 128], sizes = [8, 128], strides = [1, 1]} : vector<8x256xf32> to vector<8x128xf32>
    %70 = arith.truncf %69 : vector<8x128xf32> to vector<8x128xbf16>
    %c1 = arith.constant 1 : index
    %c0_46 = arith.constant 0 : index
    %c0_47 = arith.constant 0 : index
    %c0_48 = arith.constant 0 : index
    %71 = vector.load %arg5[%c1, %c0_46, %c0_47, %c0_48] : memref<2x1x8x128xbf16, #tpu.memory_space<vmem>>, vector<1x1x8x128xbf16>
    %72 = vector.shape_cast %71 : vector<1x1x8x128xbf16> to vector<8x128xbf16>
    %73 = vector.shape_cast %70 : vector<8x128xbf16> to vector<1x1x8x128xbf16>
    tpu.vector_store %arg5[%c1, %c0_46, %c0_47, %c0_48], %73 {strides = array<i32>} : memref<2x1x8x128xbf16, #tpu.memory_space<vmem>>, vector<1x1x8x128xbf16>,
    %c7_i32 = arith.constant 7 : i32
    %74 = arith.cmpi eq, %arg0, %c7_i32 : i32
    %75 = arith.extui %74 : i1 to i32
    %c0_i32_49 = arith.constant 0 : i32
    %76 = arith.cmpi ne, %75, %c0_i32_49 : i32
    scf.if %76 {
      %c0_50 = arith.constant 0 : index
      %c0_51 = arith.constant 0 : index
      %77 = vector.load %arg9[%c0_50, %c0_51] : memref<16x1xf32, #tpu.memory_space<vmem>>, vector<16x1xf32>
      %c0_52 = arith.constant 0 : index
      %c0_53 = arith.constant 0 : index
      %78 = vector.load %arg6[%c0_52, %c0_53] : memref<16x1xf32, #tpu.memory_space<vmem>>, vector<16x1xf32>
      tpu.vector_store %arg6[%c0_52, %c0_53], %77 {strides = array<i32>} : memref<16x1xf32, #tpu.memory_space<vmem>>, vector<16x1xf32>,
    } else {
    }
    return
  }
  func.func @transform_0(%arg0: i32) -> (i32, i32, i32) {
    %c0_i32 = arith.constant 0 : i32
    %c0_i32_0 = arith.constant 0 : i32
    %c0_i32_1 = arith.constant 0 : i32
    return %arg0, %c0_i32, %c0_i32_0 : i32, i32, i32
  }
  func.func @transform_1(%arg0: i32) -> (i32, i32) {
    %c0_i32 = arith.constant 0 : i32
    %c0_i32_0 = arith.constant 0 : i32
    %c0_i32_1 = arith.constant 0 : i32
    return %c0_i32, %c0_i32_0 : i32, i32
  }
  func.func @transform_2(%arg0: i32) -> (i32, i32) {
    %c0_i32 = arith.constant 0 : i32
    %c0_i32_0 = arith.constant 0 : i32
    %c0_i32_1 = arith.constant 0 : i32
    return %c0_i32, %c0_i32_0 : i32, i32
  }
  func.func @transform_3(%arg0: i32) -> (i32, i32) {
    %c0_i32 = arith.constant 0 : i32
    %c0_i32_0 = arith.constant 0 : i32
    %c0_i32_1 = arith.constant 0 : i32
    return %c0_i32, %c0_i32_0 : i32, i32
  }
  func.func @transform_4(%arg0: i32) -> (i32, i32, i32, i32) {
    %c0_i32 = arith.constant 0 : i32
    %c0_i32_0 = arith.constant 0 : i32
    %c0_i32_1 = arith.constant 0 : i32
    %c0_i32_2 = arith.constant 0 : i32
    return %c0_i32, %arg0, %c0_i32_0, %c0_i32_1 : i32, i32, i32, i32
  }
  func.func @transform_5(%arg0: i32) -> (i32, i32) {
    %c0_i32 = arith.constant 0 : i32
    %c0_i32_0 = arith.constant 0 : i32
    %c0_i32_1 = arith.constant 0 : i32
    return %c0_i32, %c0_i32_0 : i32, i32
  }
}

module attributes {stable_mosaic.version = 11 : i64} {
  func.func @input_proj_bn_concat_kernel(%arg0: i32, %arg1: memref<2x1x8x128xbf16, #tpu.memory_space<vmem>>, %arg2: memref<2x1x4x128xf32, #tpu.memory_space<vmem>>, %arg3: memref<8x1xf32, #tpu.memory_space<vmem>>, %arg4: memref<8x1xf32, #tpu.memory_space<vmem>>, %arg5: memref<128x128xbf16, #tpu.memory_space<vmem>>, %arg6: memref<3x32x12xbf16, #tpu.memory_space<vmem>>, %arg7: memref<1x32x256xf32, #tpu.memory_space<vmem>>) attributes {dimension_semantics = [#tpu.dimension_semantics<parallel>], iteration_bounds = array<i64: 8>, scalar_prefetch = 0 : i64, scratch_operands = 0 : i64, tpu.core_type = #tpu.core_type<tc>, window_params = [{transform_indices = @transform_0, window_bounds = array<i64: 2, 1, 8, 128>}, {transform_indices = @transform_1, window_bounds = array<i64: 2, 1, 4, 128>}, {pipeline_mode = #tpu.pipeline_mode<synchronous>, transform_indices = @transform_2, window_bounds = array<i64: 8, 1>}, {pipeline_mode = #tpu.pipeline_mode<synchronous>, transform_indices = @transform_3, window_bounds = array<i64: 8, 1>}, {pipeline_mode = #tpu.pipeline_mode<synchronous>, transform_indices = @transform_4, window_bounds = array<i64: 128, 128>}, {pipeline_mode = #tpu.pipeline_mode<synchronous>, transform_indices = @transform_5, window_bounds = array<i64: 3, 32, 12>}, {transform_indices = @transform_6, window_bounds = array<i64: 1, 32, 256>}]} {
    %c0 = arith.constant 0 : index
    %c0_0 = arith.constant 0 : index
    %0 = vector.load %arg5[%c0, %c0_0] : memref<128x128xbf16, #tpu.memory_space<vmem>>, vector<128x128xbf16>
    %c0_1 = arith.constant 0 : index
    %c0_2 = arith.constant 0 : index
    %1 = vector.load %arg3[%c0_1, %c0_2] : memref<8x1xf32, #tpu.memory_space<vmem>>, vector<8x1xf32>
    %c0_3 = arith.constant 0 : index
    %c0_4 = arith.constant 0 : index
    %2 = vector.load %arg4[%c0_3, %c0_4] : memref<8x1xf32, #tpu.memory_space<vmem>>, vector<8x1xf32>
    %c0_5 = arith.constant 0 : index
    %c0_6 = arith.constant 0 : index
    %c0_7 = arith.constant 0 : index
    %3 = vector.load %arg6[%c0_5, %c0_6, %c0_7] : memref<3x32x12xbf16, #tpu.memory_space<vmem>>, vector<1x32x12xbf16>
    %4 = vector.shape_cast %3 : vector<1x32x12xbf16> to vector<32x12xbf16>
    %c1 = arith.constant 1 : index
    %c0_8 = arith.constant 0 : index
    %c0_9 = arith.constant 0 : index
    %5 = vector.load %arg6[%c1, %c0_8, %c0_9] : memref<3x32x12xbf16, #tpu.memory_space<vmem>>, vector<1x32x12xbf16>
    %6 = vector.shape_cast %5 : vector<1x32x12xbf16> to vector<32x12xbf16>
    %c2 = arith.constant 2 : index
    %c0_10 = arith.constant 0 : index
    %c0_11 = arith.constant 0 : index
    %7 = vector.load %arg6[%c2, %c0_10, %c0_11] : memref<3x32x12xbf16, #tpu.memory_space<vmem>>, vector<1x32x12xbf16>
    %8 = vector.shape_cast %7 : vector<1x32x12xbf16> to vector<32x12xbf16>
    %c0_12 = arith.constant 0 : index
    %c0_13 = arith.constant 0 : index
    %c0_14 = arith.constant 0 : index
    %c0_15 = arith.constant 0 : index
    %9 = vector.load %arg1[%c0_12, %c0_13, %c0_14, %c0_15] : memref<2x1x8x128xbf16, #tpu.memory_space<vmem>>, vector<1x1x8x128xbf16>
    %10 = vector.shape_cast %9 : vector<1x1x8x128xbf16> to vector<8x128xbf16>
    %11 = arith.extf %10 : vector<8x128xbf16> to vector<8x128xf32>
    %12 = vector.broadcast %1 : vector<8x1xf32> to vector<8x128xf32>
    %13 = arith.mulf %11, %12 : vector<8x128xf32>
    %14 = vector.broadcast %2 : vector<8x1xf32> to vector<8x128xf32>
    %15 = arith.addf %13, %14 : vector<8x128xf32>
    %cst = arith.constant 0.000000e+00 : f32
    %16 = vector.broadcast %cst : f32 to vector<8x128xf32>
    %17 = arith.maximumf %15, %16 : vector<8x128xf32>
    %c0_16 = arith.constant 0 : index
    %c0_17 = arith.constant 0 : index
    %c0_18 = arith.constant 0 : index
    %c0_19 = arith.constant 0 : index
    %18 = vector.load %arg2[%c0_16, %c0_17, %c0_18, %c0_19] : memref<2x1x4x128xf32, #tpu.memory_space<vmem>>, vector<1x1x4x128xf32>
    %19 = vector.shape_cast %18 : vector<1x1x4x128xf32> to vector<4x128xf32>
    %20 = tpu.concatenate %17, %19 in 0 : vector<8x128xf32>, vector<4x128xf32> -> vector<12x128xf32>
    %21 = arith.truncf %20 : vector<12x128xf32> to vector<12x128xbf16>
    %cst_20 = arith.constant dense<0.000000e+00> : vector<32x128xf32>
    %22 = tpu.matmul %4, %21, %cst_20 {dimension_numbers = #tpu.dot_dimension_numbers<[1], [0], [0], [1], [0, 0, 1, 1], [], []>} : vector<32x12xbf16>, vector<12x128xbf16>, vector<32x128xf32> -> vector<32x128xf32>
    %cst_21 = arith.constant dense<0.000000e+00> : vector<12x128xf32>
    %23 = tpu.matmul %21, %0, %cst_21 {dimension_numbers = #tpu.dot_dimension_numbers<[1], [0], [0], [1], [0, 0, 1, 1], [], []>} : vector<12x128xbf16>, vector<128x128xbf16>, vector<12x128xf32> -> vector<12x128xf32>
    %24 = arith.truncf %23 : vector<12x128xf32> to vector<12x128xbf16>
    %cst_22 = arith.constant dense<0.000000e+00> : vector<32x128xf32>
    %25 = tpu.matmul %6, %24, %cst_22 {dimension_numbers = #tpu.dot_dimension_numbers<[1], [0], [0], [1], [0, 0, 1, 1], [], []>} : vector<32x12xbf16>, vector<12x128xbf16>, vector<32x128xf32> -> vector<32x128xf32>
    %26 = arith.addf %22, %25 : vector<32x128xf32>
    %cst_23 = arith.constant dense<0.000000e+00> : vector<12x128xf32>
    %27 = tpu.matmul %24, %0, %cst_23 {dimension_numbers = #tpu.dot_dimension_numbers<[1], [0], [0], [1], [0, 0, 1, 1], [], []>} : vector<12x128xbf16>, vector<128x128xbf16>, vector<12x128xf32> -> vector<12x128xf32>
    %cst_24 = arith.constant 2.000000e+00 : f32
    %28 = vector.broadcast %cst_24 : f32 to vector<12x128xf32>
    %29 = arith.mulf %28, %27 : vector<12x128xf32>
    %30 = arith.subf %29, %20 : vector<12x128xf32>
    %31 = arith.truncf %30 : vector<12x128xf32> to vector<12x128xbf16>
    %cst_25 = arith.constant dense<0.000000e+00> : vector<32x128xf32>
    %32 = tpu.matmul %8, %31, %cst_25 {dimension_numbers = #tpu.dot_dimension_numbers<[1], [0], [0], [1], [0, 0, 1, 1], [], []>} : vector<32x12xbf16>, vector<12x128xbf16>, vector<32x128xf32> -> vector<32x128xf32>
    %33 = arith.addf %26, %32 : vector<32x128xf32>
    %c0_26 = arith.constant 0 : index
    %c0_27 = arith.constant 0 : index
    %c0_28 = arith.constant 0 : index
    %34 = vector.load %arg7[%c0_26, %c0_27, %c0_28] : memref<1x32x256xf32, #tpu.memory_space<vmem>>, vector<1x32x128xf32>
    %35 = vector.shape_cast %34 : vector<1x32x128xf32> to vector<32x128xf32>
    %36 = vector.shape_cast %33 : vector<32x128xf32> to vector<1x32x128xf32>
    tpu.vector_store %arg7[%c0_26, %c0_27, %c0_28], %36 {strides = array<i32>} : memref<1x32x256xf32, #tpu.memory_space<vmem>>, vector<1x32x128xf32>,
    %c1_29 = arith.constant 1 : index
    %c0_30 = arith.constant 0 : index
    %c0_31 = arith.constant 0 : index
    %c0_32 = arith.constant 0 : index
    %37 = vector.load %arg1[%c1_29, %c0_30, %c0_31, %c0_32] : memref<2x1x8x128xbf16, #tpu.memory_space<vmem>>, vector<1x1x8x128xbf16>
    %38 = vector.shape_cast %37 : vector<1x1x8x128xbf16> to vector<8x128xbf16>
    %39 = arith.extf %38 : vector<8x128xbf16> to vector<8x128xf32>
    %40 = vector.broadcast %1 : vector<8x1xf32> to vector<8x128xf32>
    %41 = arith.mulf %39, %40 : vector<8x128xf32>
    %42 = vector.broadcast %2 : vector<8x1xf32> to vector<8x128xf32>
    %43 = arith.addf %41, %42 : vector<8x128xf32>
    %cst_33 = arith.constant 0.000000e+00 : f32
    %44 = vector.broadcast %cst_33 : f32 to vector<8x128xf32>
    %45 = arith.maximumf %43, %44 : vector<8x128xf32>
    %c1_34 = arith.constant 1 : index
    %c0_35 = arith.constant 0 : index
    %c0_36 = arith.constant 0 : index
    %c0_37 = arith.constant 0 : index
    %46 = vector.load %arg2[%c1_34, %c0_35, %c0_36, %c0_37] : memref<2x1x4x128xf32, #tpu.memory_space<vmem>>, vector<1x1x4x128xf32>
    %47 = vector.shape_cast %46 : vector<1x1x4x128xf32> to vector<4x128xf32>
    %48 = tpu.concatenate %45, %47 in 0 : vector<8x128xf32>, vector<4x128xf32> -> vector<12x128xf32>
    %49 = arith.truncf %48 : vector<12x128xf32> to vector<12x128xbf16>
    %cst_38 = arith.constant dense<0.000000e+00> : vector<32x128xf32>
    %50 = tpu.matmul %4, %49, %cst_38 {dimension_numbers = #tpu.dot_dimension_numbers<[1], [0], [0], [1], [0, 0, 1, 1], [], []>} : vector<32x12xbf16>, vector<12x128xbf16>, vector<32x128xf32> -> vector<32x128xf32>
    %cst_39 = arith.constant dense<0.000000e+00> : vector<12x128xf32>
    %51 = tpu.matmul %49, %0, %cst_39 {dimension_numbers = #tpu.dot_dimension_numbers<[1], [0], [0], [1], [0, 0, 1, 1], [], []>} : vector<12x128xbf16>, vector<128x128xbf16>, vector<12x128xf32> -> vector<12x128xf32>
    %52 = arith.truncf %51 : vector<12x128xf32> to vector<12x128xbf16>
    %cst_40 = arith.constant dense<0.000000e+00> : vector<32x128xf32>
    %53 = tpu.matmul %6, %52, %cst_40 {dimension_numbers = #tpu.dot_dimension_numbers<[1], [0], [0], [1], [0, 0, 1, 1], [], []>} : vector<32x12xbf16>, vector<12x128xbf16>, vector<32x128xf32> -> vector<32x128xf32>
    %54 = arith.addf %50, %53 : vector<32x128xf32>
    %cst_41 = arith.constant dense<0.000000e+00> : vector<12x128xf32>
    %55 = tpu.matmul %52, %0, %cst_41 {dimension_numbers = #tpu.dot_dimension_numbers<[1], [0], [0], [1], [0, 0, 1, 1], [], []>} : vector<12x128xbf16>, vector<128x128xbf16>, vector<12x128xf32> -> vector<12x128xf32>
    %cst_42 = arith.constant 2.000000e+00 : f32
    %56 = vector.broadcast %cst_42 : f32 to vector<12x128xf32>
    %57 = arith.mulf %56, %55 : vector<12x128xf32>
    %58 = arith.subf %57, %48 : vector<12x128xf32>
    %59 = arith.truncf %58 : vector<12x128xf32> to vector<12x128xbf16>
    %cst_43 = arith.constant dense<0.000000e+00> : vector<32x128xf32>
    %60 = tpu.matmul %8, %59, %cst_43 {dimension_numbers = #tpu.dot_dimension_numbers<[1], [0], [0], [1], [0, 0, 1, 1], [], []>} : vector<32x12xbf16>, vector<12x128xbf16>, vector<32x128xf32> -> vector<32x128xf32>
    %61 = arith.addf %54, %60 : vector<32x128xf32>
    %c0_44 = arith.constant 0 : index
    %c0_45 = arith.constant 0 : index
    %c128 = arith.constant 128 : index
    %62 = vector.load %arg7[%c0_44, %c0_45, %c128] : memref<1x32x256xf32, #tpu.memory_space<vmem>>, vector<1x32x128xf32>
    %63 = vector.shape_cast %62 : vector<1x32x128xf32> to vector<32x128xf32>
    %64 = vector.shape_cast %61 : vector<32x128xf32> to vector<1x32x128xf32>
    tpu.vector_store %arg7[%c0_44, %c0_45, %c128], %64 {strides = array<i32>} : memref<1x32x256xf32, #tpu.memory_space<vmem>>, vector<1x32x128xf32>,
    return
  }
  func.func @transform_0(%arg0: i32) -> (i32, i32, i32, i32) {
    %c0_i32 = arith.constant 0 : i32
    %c0_i32_0 = arith.constant 0 : i32
    %c0_i32_1 = arith.constant 0 : i32
    %c0_i32_2 = arith.constant 0 : i32
    return %c0_i32, %arg0, %c0_i32_0, %c0_i32_1 : i32, i32, i32, i32
  }
  func.func @transform_1(%arg0: i32) -> (i32, i32, i32, i32) {
    %c0_i32 = arith.constant 0 : i32
    %c0_i32_0 = arith.constant 0 : i32
    %c0_i32_1 = arith.constant 0 : i32
    %c0_i32_2 = arith.constant 0 : i32
    return %c0_i32, %arg0, %c0_i32_0, %c0_i32_1 : i32, i32, i32, i32
  }
  func.func @transform_2(%arg0: i32) -> (i32, i32) {
    %c0_i32 = arith.constant 0 : i32
    %c0_i32_0 = arith.constant 0 : i32
    %c0_i32_1 = arith.constant 0 : i32
    return %c0_i32, %c0_i32_0 : i32, i32
  }
  func.func @transform_3(%arg0: i32) -> (i32, i32) {
    %c0_i32 = arith.constant 0 : i32
    %c0_i32_0 = arith.constant 0 : i32
    %c0_i32_1 = arith.constant 0 : i32
    return %c0_i32, %c0_i32_0 : i32, i32
  }
  func.func @transform_4(%arg0: i32) -> (i32, i32) {
    %c0_i32 = arith.constant 0 : i32
    %c0_i32_0 = arith.constant 0 : i32
    %c0_i32_1 = arith.constant 0 : i32
    return %c0_i32, %c0_i32_0 : i32, i32
  }
  func.func @transform_5(%arg0: i32) -> (i32, i32, i32) {
    %c0_i32 = arith.constant 0 : i32
    %c0_i32_0 = arith.constant 0 : i32
    %c0_i32_1 = arith.constant 0 : i32
    %c0_i32_2 = arith.constant 0 : i32
    return %c0_i32, %c0_i32_0, %c0_i32_1 : i32, i32, i32
  }
  func.func @transform_6(%arg0: i32) -> (i32, i32, i32) {
    %c0_i32 = arith.constant 0 : i32
    %c0_i32_0 = arith.constant 0 : i32
    %c0_i32_1 = arith.constant 0 : i32
    return %arg0, %c0_i32, %c0_i32_0 : i32, i32, i32
  }
}

module attributes {stable_mosaic.version = 11 : i64} {
  func.func @bn_relu_kernel(%arg0: i32, %arg1: memref<1x8x8x128xbf16, #tpu.memory_space<vmem>>, %arg2: memref<8x1xf32, #tpu.memory_space<vmem>>, %arg3: memref<8x1xf32, #tpu.memory_space<vmem>>, %arg4: memref<1x8x8x128xf32, #tpu.memory_space<vmem>>) attributes {dimension_semantics = [#tpu.dimension_semantics<parallel>], iteration_bounds = array<i64: 2>, scalar_prefetch = 0 : i64, scratch_operands = 0 : i64, tpu.core_type = #tpu.core_type<tc>, window_params = [{transform_indices = @transform_0, window_bounds = array<i64: 1, 8, 8, 128>}, {pipeline_mode = #tpu.pipeline_mode<synchronous>, transform_indices = @transform_1, window_bounds = array<i64: 8, 1>}, {pipeline_mode = #tpu.pipeline_mode<synchronous>, transform_indices = @transform_2, window_bounds = array<i64: 8, 1>}, {transform_indices = @transform_3, window_bounds = array<i64: 1, 8, 8, 128>}]} {
    %c0 = arith.constant 0 : index
    %c0_0 = arith.constant 0 : index
    %0 = vector.load %arg2[%c0, %c0_0] : memref<8x1xf32, #tpu.memory_space<vmem>>, vector<8x1xf32>
    %1 = vector.shape_cast %0 : vector<8x1xf32> to vector<1x8x1xf32>
    %c0_1 = arith.constant 0 : index
    %c0_2 = arith.constant 0 : index
    %2 = vector.load %arg3[%c0_1, %c0_2] : memref<8x1xf32, #tpu.memory_space<vmem>>, vector<8x1xf32>
    %3 = vector.shape_cast %2 : vector<8x1xf32> to vector<1x8x1xf32>
    %c0_3 = arith.constant 0 : index
    %c0_4 = arith.constant 0 : index
    %c0_5 = arith.constant 0 : index
    %c0_6 = arith.constant 0 : index
    %4 = vector.load %arg1[%c0_3, %c0_4, %c0_5, %c0_6] : memref<1x8x8x128xbf16, #tpu.memory_space<vmem>>, vector<1x8x8x128xbf16>
    %5 = vector.shape_cast %4 : vector<1x8x8x128xbf16> to vector<8x8x128xbf16>
    %6 = arith.extf %5 : vector<8x8x128xbf16> to vector<8x8x128xf32>
    %7 = vector.broadcast %1 : vector<1x8x1xf32> to vector<8x8x128xf32>
    %8 = arith.mulf %6, %7 : vector<8x8x128xf32>
    %9 = vector.broadcast %3 : vector<1x8x1xf32> to vector<8x8x128xf32>
    %10 = arith.addf %8, %9 : vector<8x8x128xf32>
    %cst = arith.constant 0.000000e+00 : f32
    %11 = vector.broadcast %cst : f32 to vector<8x8x128xf32>
    %12 = arith.maximumf %10, %11 : vector<8x8x128xf32>
    %c0_7 = arith.constant 0 : index
    %c0_8 = arith.constant 0 : index
    %c0_9 = arith.constant 0 : index
    %c0_10 = arith.constant 0 : index
    %13 = vector.load %arg4[%c0_7, %c0_8, %c0_9, %c0_10] : memref<1x8x8x128xf32, #tpu.memory_space<vmem>>, vector<1x8x8x128xf32>
    %14 = vector.shape_cast %13 : vector<1x8x8x128xf32> to vector<8x8x128xf32>
    %15 = vector.shape_cast %12 : vector<8x8x128xf32> to vector<1x8x8x128xf32>
    tpu.vector_store %arg4[%c0_7, %c0_8, %c0_9, %c0_10], %15 {strides = array<i32>} : memref<1x8x8x128xf32, #tpu.memory_space<vmem>>, vector<1x8x8x128xf32>,
    return
  }
  func.func @transform_0(%arg0: i32) -> (i32, i32, i32, i32) {
    %c0_i32 = arith.constant 0 : i32
    %c0_i32_0 = arith.constant 0 : i32
    %c0_i32_1 = arith.constant 0 : i32
    %c0_i32_2 = arith.constant 0 : i32
    return %arg0, %c0_i32, %c0_i32_0, %c0_i32_1 : i32, i32, i32, i32
  }
  func.func @transform_1(%arg0: i32) -> (i32, i32) {
    %c0_i32 = arith.constant 0 : i32
    %c0_i32_0 = arith.constant 0 : i32
    %c0_i32_1 = arith.constant 0 : i32
    return %c0_i32, %c0_i32_0 : i32, i32
  }
  func.func @transform_2(%arg0: i32) -> (i32, i32) {
    %c0_i32 = arith.constant 0 : i32
    %c0_i32_0 = arith.constant 0 : i32
    %c0_i32_1 = arith.constant 0 : i32
    return %c0_i32, %c0_i32_0 : i32, i32
  }
  func.func @transform_3(%arg0: i32) -> (i32, i32, i32, i32) {
    %c0_i32 = arith.constant 0 : i32
    %c0_i32_0 = arith.constant 0 : i32
    %c0_i32_1 = arith.constant 0 : i32
    %c0_i32_2 = arith.constant 0 : i32
    return %arg0, %c0_i32, %c0_i32_0, %c0_i32_1 : i32, i32, i32, i32
  }
}

</mosaic_0001>

<bundles_post_ra>
// kernel: convlstm_spherical_cheb_bn_pool_concat.5
= control target key start
LH: loop header
LB: loop body
LE: loop exit
PB: predicated region body
PF: predicated region fallthrough
CT: control target
= control target key end

     0   :  { %8 = vsyncpa [#allocation4], 0  ;;  %s1203_s12 = smov 0   ;;  %s1205_s13 = smov 0   ;;  %s1344_s0 = inlined_call_operand.vmem [shape: f32[2,8,4,32], index: 0, kind: input, shape index: {}]   ;;  %s1345_s1 = inlined_call_operand.hbm [shape: bf16[32,384], index: 1, kind: input, shape index: {}]   ;;  %s1346_s2 = inlined_call_operand.vmem [shape: bf16[3,32,4], index: 2, kind: input, shape index: {}]   ;;  %s1347_s3 = inlined_call_operand.vmem [shape: f32[8,32,256], index: 3, kind: output, shape index: {}]  }
   0x1   :  { %s1207_s14 = smov 0  }
   0x2 LB: > { %s1219_s15 = sadd.s32 4294967295, %s1175_s14   ;;  %s1222_s16 = sadd.s32 1, %s1175_s14   ;;  %s1175_s14 = sphi %s1207_s14, %s1359_s14   ;;  %s1171_s13 = sphi %s1205_s13, %s1358_s13   ;;  %s1167_s12 = sphi %s1203_s12, %s1357_s12  }
   0x3   : > { %s18_s17 = ssub.s32 %s1175_s14, %s1222_s16  ;;  %s21_s18 = sadd.s32 1, %s1171_s13 }
   0x4   : > { %p19_p0 = scmp.eq.s32.totalorder %s18_s17, 0  ;;  %p28_p1 = scmp.ne.s32.totalorder %s1171_s13, %s1167_s12 }
   0x5   : > { %p29_p2 = scmp.eq.s32.totalorder %s1175_s14, 0  ;;  %p919_p3 = scmp.ge.s32.totalorder %s1175_s14, 1 }
   0x6   : > { %s1232_s19 = scalar_select %p19_p0, %s1171_s13, %s21_s18  }
   0x7   : > { %p1234_p4 = por %p29_p2, %p28_p1  ;;  %p113_p5 = scmp.lt.s32.totalorder %s1175_s14, 9 }
   0x8   : > { %p1348_p6 = scmp.eq.s32.totalorder %s1219_s15, 0  ;;  %s1177_s22 = smov [#allocation3]  }
   0x9   : > { %s1350_s20 = scalar_select %p1234_p4, 1, 0 }
   0xa   : > { %p1240_p7 = pnand %p919_p3, %p113_p5  ;;  %s125_s23 = sshll.u32 %s1177_s22, 4  ;;  %s126_s23 = int_to_ptr.vmem [resolvable:$true] %s125_s23 }
   0xb   : > { %s1121_s27 = scalar_lea.hbm %s1345_s1, 768 }
   0xc   : > { %s1351_s21 = scalar_select %p1240_p7, 1, 0 }
   0xd   : > { %p1071_p8 = pneg %p1240_p7  ;;  %p1122_p10 = scmp.ne.s32.totalorder %s1345_s1, %s1121_s27 }
   0xe   : > { %p1128_p0 = scmp.lt.u32.totalorder %s1121_s27, %s1345_s1 }
   0xf   : > { %p1248_p9 = pnand %p1348_p6, %p1071_p8 }
  0x11   : > { %p1123_p11 = pneg %p1248_p9 }
  0x13   : > { %p1124_p12 = pnand %p1123_p11, %p1122_p10 }
  0x15   : > { %p1125_p13 = pneg %p1124_p12 }
  0x17   : > { %p1130_p1 = pnand %p1128_p0, %p1125_p13 }
  0x19   : > { %1133 = shalt.err (!%p1130_p1)
}
  0x1a   : > { %s1134_s5 = scalar_lea.vmem %s126_s23, 768  ;;  %p1142_p8 = scmp.lt.s32.totalorder %s126_s23, %s126_s23 }
  0x1b   : > { %p1135_p2 = scmp.ne.s32.totalorder %s126_s23, %s1134_s5  ;;  %p1143_p6 = scmp.lt.s32.totalorder %s1134_s5, %s1134_s5 }
  0x1d   : > { %p1137_p3 = pnand %p1135_p2, %p1123_p11  ;;  %p1144_p7 = por %p1143_p6, %p1142_p8 }
  0x1f   : > { %p1138_p5 = pneg %p1137_p3 }
  0x21   : > { %p1145_p4 = pnand %p1144_p7, %p1138_p5 }
  0x23   : > { %1148 = shalt.err (!%p1145_p4)
}
  0x24   : > { %s1178_s6 = smov 192   ;;  %s1179_s7 = smov 12  }
  0x25   : > { %1074 = dma.hbm_to_vmem [thread:$0]  (!%p1248_p9), %s1345_s1, 768, %s126_s23, [#allocation4], %s1178_s6, %s1178_s6, %s1179_s7  }
  0x26   : > { %p921_p10 = scmp.ge.s32.totalorder %s1175_s14, 8 }
  0x27   : > { %p1353_p12 = scmp.ne.s32.totalorder (!%p921_p10), %s1350_s20, 0 }
  0x28   : > { %138 = sbr.rel (%p921_p10) target bundleno = 54 (0x36), region = 24 }
  0x2f   : > { %141 = sbr.rel (!%p1353_p12) target bundleno = 54 (0x36), region = 28  ;;  %s143_s10 = sand.u32 (%p1353_p12), 1, %s1171_s13  }
  0x30   : > { %s923_s11 = sshll.u32 (%p1353_p12), %s1175_s14, 2  ;;  %s922_s17 = sshll.u32 (%p1353_p12), %s143_s10, 3 }
  0x31   : > { %s147_s25 = scalar_lea.vmem (%p1353_p12), %s1344_s0, %s923_s11  ;;  %s145_s24 = scalar_lea.vmem (%p1353_p12), [#allocation2], %s922_s17 }
  0x32   : > { %v163_v0 = vld [vmem:[%s147_s25] sm:$0xf] (%p1353_p12) }
  0x33   : > { %v165_v1 = vld [vmem:[%s147_s25 + $0x20] sm:$0xf] (%p1353_p12)  ;;  %164 = vst [vmem:[%s145_s24] sm:$0xf] (%p1353_p12), %v163_v0 }
  0x34   : > { %166 = vst [vmem:[%s145_s24 + $0x4] sm:$0xf] (%p1353_p12), %v165_v1 }
  0x36 PF: > { %p1354_p4 = scmp.ne.s32.totalorder %s1351_s21, 0 }
  0x37   : > { %s199_s20 = sand.u32 (!%p1354_p4), 1, %s1167_s12   ;;  %p1355_p6 = scmp.eq.s32.totalorder (!%p1354_p4), %s1219_s15, 0 }
  0x38   : > { %196 = sbr.rel (%p1354_p4) target bundleno = 533 (0x215), region = 69  ;;  %s925_s23 = sshll.u32 (!%p1354_p4), %s199_s20, 3 }
  0x39   : > { %s201_s14 = scalar_lea.vmem (!%p1354_p4), [#allocation2], %s925_s23 }
  0x3f   : > { %1162 = dma.done.wait (%p1355_p6), [#allocation4], 768   ;;  %p1356_p7 = pmov %p1355_p6 }
  0x40   : > { %v1180_v2 = vmov 0   ;;  %v1107_v3 = vld [vmem:[#allocation3 + $0x4] ss:$12 sps:$4 sm:$0xff]   ;;  %v1109_v4 = vld [vmem:[#allocation3] ss:$12 sps:$4 sm:$0xff]   ;;  %vm288_vm0 = vcmask 261120  }
  0x41   : > { %1164 = vsyncadd (%p1356_p7), [#allocation4], 4294966528  ;;  %324 = vmatprep.mubr.bf16.mxu0 %v1180_v2  ;;  %628 = vmatprep.mubr.bf16.mxu1 %v1180_v2  ;;  %v1110_v5 = vld [vmem:[#allocation3 + $0x1c] ss:$12 sps:$4 sm:$0xff]   ;;  %v1112_v6 = vld [vmem:[#allocation3 + $0x18] ss:$12 sps:$4 sm:$0xff]  }
  0x42   : > { %292 = vmatprep.subr.bf16.mxu0 %v1107_v3  ;;  %596 = vmatprep.subr.bf16.mxu1 %v1107_v3  ;;  %v254_v7 = vld [vmem:[%s201_s14] sm:$0xf]  ;;  %v957_v8 = vld [vmem:[%s201_s14 + $0x4] sm:$0xf]  ;;  %v1181_v12 = vmov 0.0   ;;  %vm1182_vm1 = vmmov 0  }
  0x43   : > { %293 = vmatpush1.bf16.msra.mxu0 %v1109_v4  ;;  %597 = vmatpush1.bf16.msra.mxu1 %v1109_v4  ;;  %v1113_v9 = vld [vmem:[#allocation3 + $0x8] ss:$12 sps:$4 sm:$0xff]   ;;  %v255_v10 = vpack.c.bf16 %v254_v7, %v254_v7  ;;  %v592_v11 = vpack.c.bf16 %v957_v8, %v957_v8  ;;  %v1114_v13 = vld [vmem:[#allocation3 + $0x20] ss:$12 sps:$4 sm:$0xff]   ;;  %vm385_vm2 = vcmask 31744   ;;  %vm392_vm3 = vcmask 1041408  }
  0x44   : > { %294 = vmatprep.subr.bf16.mxu0 %v1110_v5  ;;  %598 = vmatprep.subr.bf16.mxu1 %v1110_v5  ;;  %v1115_v14 = vld [vmem:[%s1346_s2 + $0x10] sm:$0xff]   ;;  %v1116_v29 = vld [vmem:[%s1346_s2 + $0x18] sm:$0xff]   ;;  %v1117_v30 = vld [vmem:[%s1346_s2] sm:$0xff]   ;;  %p226_p9 = scmp.lt.s32.totalorder %s1219_s15, 7 }
  0x45   : > { %v1118_v43 = vld [vmem:[%s1346_s2 + $0x8] sm:$0xff]   ;;  %v1119_v46 = vld [vmem:[%s1346_s2 + $0x20] sm:$0xff]  }
  0x46   : > { %v1120_v47 = vld [vmem:[%s1346_s2 + $0x28] sm:$0xff]   ;;  %s1361_s15 = smov (!%p226_p9, %s1219_s15), 7 }
  0x47   : > { %295 = vmatpush1.bf16.msra.mxu0 %v1112_v6  ;;  %599 = vmatpush1.bf16.msra.mxu1 %v1112_v6  ;;  %s968_s9 = sshll.u32 %s1361_s15, 6 }
  0x48   : > { %993 = vmatprep.subr.bf16.mxu0 %v1181_v12  ;;  %1019 = vmatprep.subr.bf16.mxu1 %v1181_v12  ;;  %s230_s17 = scalar_lea.vmem %s1347_s3, %s968_s9 }
  0x4a   : > { %943 = vmatmul.mubr.msk.bf16.vlgmr.msra.gmra.mrb[0].mxu0 %vm288_vm0, %v255_v10  ;;  %958 = vmatmul.mubr.msk.bf16.vlgmr.msra.gmra.mrb[0].mxu1 %vm288_vm0, %v592_v11 }
  0x4b   : > { %994 = vmatpush3.bf16.msra.mxu0 %v1113_v9  ;;  %1020 = vmatpush3.bf16.msra.mxu1 %v1113_v9 }
  0x4c   : > { %995 = vmatprep.subr.bf16.mxu0 %v1181_v12  ;;  %1021 = vmatprep.subr.bf16.mxu1 %v1181_v12 }
  0x4d   : > { %997 = vmatprep.mubr.msk.bf16.mxu0 %vm1182_vm1, %v1181_v12  ;;  %1023 = vmatprep.mubr.msk.bf16.mxu1 %vm1182_vm1, %v1181_v12 }
  0x4f   : > { %996 = vmatpush3.bf16.msra.mxu0 %v1114_v13  ;;  %1022 = vmatpush3.bf16.msra.mxu1 %v1114_v13 }
  0x52   : > { %998 = vmatmul.mubr.msk.bf16.vlgmr.msra.gmra.mrb[4].mxu0 %vm288_vm0, %v255_v10  ;;  %1024 = vmatmul.mubr.msk.bf16.vlgmr.msra.gmra.mrb[4].mxu1 %vm288_vm0, %v592_v11 }
  0x53   : > { %1003 = vmatprep.mubr.msk.bf16.mxu0 %vm385_vm2, %v1115_v14  ;;  %1029 = vmatprep.mubr.msk.bf16.mxu1 %vm385_vm2, %v1115_v14 }
 0x11d   : > { %v326_v15 = vpop.f32.mrb[0].mxu0  ;;  %v630_v16 = vpop.f32.mrb[0].mxu1 }
 0x11e   : > { %v328_v17 = vpop.f32.mrb[1].mxu0  ;;  %v632_v18 = vpop.f32.mrb[1].mxu1  ;;  %v373_v25 = vpack.c.bf16 %v326_v15, %v326_v15  ;;  %v677_v26 = vpack.c.bf16 %v630_v16, %v630_v16 }
 0x11f   : > { %v374_v19 = vpack.c.bf16 %v328_v17, %v328_v17  ;;  %v678_v20 = vpack.c.bf16 %v632_v18, %v632_v18  ;;  %v330_v21 = vpop.f32.mrb[2].mxu0  ;;  %v634_v22 = vpop.f32.mrb[2].mxu1 }
 0x120   : > { %v331_v23 = vpop.f32.mrb[3].mxu0  ;;  %v635_v24 = vpop.f32.mrb[3].mxu1  ;;  %v462_v31 = vsel %vm392_vm3, %v373_v25, 0  ;;  %v732_v32 = vsel %vm392_vm3, %v677_v26, 0 }
 0x121   : > { %v394_v27 = vsel %vm392_vm3, %v374_v19, 0  ;;  %v680_v28 = vsel %vm392_vm3, %v678_v20, 0  ;;  %1061 = vmatprep.subr.msk.bf16.mxu0 %vm392_vm3, %v374_v19  ;;  %1064 = vmatprep.subr.msk.bf16.mxu1 %vm392_vm3, %v678_v20 }
 0x122   : > { %1002 = vmatpush3.bf16.msra.mxu0 %v394_v27  ;;  %1028 = vmatpush3.bf16.msra.mxu1 %v680_v28 }
 0x123   : > { %1062 = vmatprep.subr.msk.bf16.mxu0 %vm392_vm3, %v373_v25  ;;  %1065 = vmatprep.subr.msk.bf16.mxu1 %vm392_vm3, %v677_v26 }
 0x125   : > { %1004 = vmatmul.mubr.msk.bf16.vlgmr.msra.gmra.mrb[8].mxu0 %vm385_vm2, %v1116_v29  ;;  %1030 = vmatmul.mubr.msk.bf16.vlgmr.msra.gmra.mrb[8].mxu1 %vm385_vm2, %v1116_v29  ;;  %v367_v33 = vpop.f32.mrb[4].mxu0  ;;  %v671_v34 = vpop.f32.mrb[4].mxu1 }
 0x126   : > { %1008 = vmatpush3.bf16.msra.mxu0 %v462_v31  ;;  %1034 = vmatpush3.bf16.msra.mxu1 %v732_v32  ;;  %v513_v35 = vpack.c.bf16 %v367_v33, %v367_v33  ;;  %v783_v36 = vpack.c.bf16 %v671_v34, %v671_v34  ;;  %v999_v37 = vpop.f32.mrb[5].mxu0  ;;  %v1025_v38 = vpop.f32.mrb[5].mxu1 }
 0x127   : > { %1009 = vmatprep.mubr.msk.bf16.mxu0 %vm385_vm2, %v1117_v30  ;;  %1035 = vmatprep.mubr.msk.bf16.mxu1 %vm385_vm2, %v1117_v30  ;;  %v370_v39 = vpop.f32.mrb[6].mxu0  ;;  %v674_v40 = vpop.f32.mrb[6].mxu1 }
 0x128   : > { %v1000_v41 = vpop.f32.mrb[7].mxu0  ;;  %v1026_v42 = vpop.f32.mrb[7].mxu1  ;;  %1063 = vmatprep.subr.msk.bf16.mxu0 %vm392_vm3, %v513_v35  ;;  %1066 = vmatprep.subr.msk.bf16.mxu1 %vm392_vm3, %v783_v36  ;;  %v531_v44 = vsel %vm392_vm3, %v513_v35, 0  ;;  %v785_v45 = vsel %vm392_vm3, %v783_v36, 0 }
 0x131   : > { %1010 = vmatmul.mubr.msk.bf16.vlgmr.msra.gmra.mrb[8].mxu0 %vm385_vm2, %v1118_v43  ;;  %1036 = vmatmul.mubr.msk.bf16.vlgmr.msra.gmra.mrb[8].mxu1 %vm385_vm2, %v1118_v43 }
 0x132   : > { %1014 = vmatpush3.bf16.msra.mxu0 %v531_v44  ;;  %1040 = vmatpush3.bf16.msra.mxu1 %v785_v45 }
 0x133   : > { %1015 = vmatprep.mubr.msk.bf16.mxu0 %vm385_vm2, %v1119_v46  ;;  %1041 = vmatprep.mubr.msk.bf16.mxu1 %vm385_vm2, %v1119_v46 }
 0x13d   : > { %1016 = vmatmul.mubr.msk.bf16.vlgmr.msra.gmra.mrb[8].mxu0 %vm385_vm2, %v1120_v47  ;;  %1042 = vmatmul.mubr.msk.bf16.vlgmr.msra.gmra.mrb[8].mxu1 %vm385_vm2, %v1120_v47 }
 0x210   : > { %v1017_v48 = vpop.f32.mrb[8].mxu0  ;;  %v1043_v49 = vpop.f32.mrb[8].mxu1 }
 0x211   : > { %588 = vst [vmem:[%s230_s17 + $0x20] sm:$0xff] %v1017_v48  ;;  %842 = vst [vmem:[%s230_s17 + $0x28] sm:$0xff] %v1043_v49  ;;  %v567_v50 = vpop.f32.mrb[9].mxu0  ;;  %v821_v51 = vpop.f32.mrb[9].mxu1 }
 0x212   : > { %586 = vst [vmem:[%s230_s17] sm:$0xff] %v567_v50  ;;  %840 = vst [vmem:[%s230_s17 + $0x8] sm:$0xff] %v821_v51  ;;  %v1018_v52 = vpop.f32.mrb[10].mxu0  ;;  %v1044_v53 = vpop.f32.mrb[10].mxu1 }
 0x213   : > { %589 = vst [vmem:[%s230_s17 + $0x30] sm:$0xff] %v1018_v52  ;;  %843 = vst [vmem:[%s230_s17 + $0x38] sm:$0xff] %v1044_v53  ;;  %v570_v54 = vpop.f32.mrb[11].mxu0  ;;  %v824_v55 = vpop.f32.mrb[11].mxu1 }
 0x214   : > { %587 = vst [vmem:[%s230_s17 + $0x10] sm:$0xff] %v570_v54  ;;  %841 = vst [vmem:[%s230_s17 + $0x18] sm:$0xff] %v824_v55 }
 0x215 PF: > { %p11_p11 = scmp.ge.s32.totalorder %s1222_s16, 10   ;;  %s1357_s12 = smov %s1171_s13 }
 0x216   : > { %s1358_s13 = smov %s1232_s19  ;;  %s1359_s14 = smov %s1222_s16 }
 0x217   :  { %13 = sbr.rel (!%p11_p11) target bundleno = 2 (0x2), region = 116 }
 0x21e   :  { %865 = vsyncpa [#allocation4], 1 }
 0x21f   :  { %867 = vsyncpa [#allocation4 + $0x1], 1 }

// kernel: convlstm_spherical_cheb_bn_pool_concat.9
= control target key start
LH: loop header
LB: loop body
LE: loop exit
PB: predicated region body
PF: predicated region fallthrough
CT: control target
= control target key end

     0   :  { %8 = vsyncpa [#allocation3], 0  ;;  %s582_s0 = inlined_call_operand.vmem [shape: bf16[2,8,8,128], index: 0, kind: input, shape index: {}]   ;;  %s583_s1 = inlined_call_operand.vmem [shape: f32[8,1], index: 1, kind: input, shape index: {}]   ;;  %s584_s2 = inlined_call_operand.vmem [shape: f32[8,1], index: 2, kind: input, shape index: {}]   ;;  %s585_s3 = inlined_call_operand.hbm [shape: f32[2,8,8,128], index: 3, kind: output, shape index: {}]  }
   0x1   :  { %10 = vsyncpa [#allocation3 + $0x1], 0  ;;  %s469_s12 = smov 0   ;;  %s471_s13 = smov 0  }
   0x2   :  { %s473_s14 = smov 0   ;;  %s475_s15 = smov 0  }
   0x3 LB: > { %s490_s16 = sadd.s32 4294967295, %s443_s15   ;;  %s305_s17 = sadd.s32 4294967294, %s443_s15   ;;  %s443_s15 = sphi %s475_s15, %s591_s15   ;;  %s439_s14 = sphi %s473_s14, %s590_s14   ;;  %s435_s13 = sphi %s471_s13, %s589_s13   ;;  %s431_s12 = sphi %s469_s12, %s588_s12  }
   0x4   : > { %s494_s18 = sadd.s32 1, %s443_s15   ;;  %s91_s19 = sadd.s32 1, %s439_s14 }
   0x5   : > { %s88_s20 = ssub.s32 %s443_s15, %s494_s18  ;;  %p101_p0 = scmp.ne.s32.totalorder %s439_s14, %s435_s13 }
   0x6   : > { %p89_p1 = scmp.eq.s32.totalorder %s88_s20, 0  ;;  %p102_p2 = scmp.eq.s32.totalorder %s490_s16, 1 }
   0x7   : > { %p107_p3 = scmp.ne.s32.totalorder %s435_s13, %s431_s12  ;;  %p108_p4 = scmp.eq.s32.totalorder %s305_s17, 1 }
   0x8   : > { %s505_s21 = scalar_select %p89_p1, %s439_s14, %s91_s19  }
   0x9   : > { %p507_p5 = por %p102_p2, %p101_p0  ;;  %p511_p6 = por %p108_p4, %p107_p3 }
   0xa   : > { %p308_p7 = scmp.ge.s32.totalorder %s443_s15, 1  ;;  %p140_p8 = scmp.lt.s32.totalorder %s443_s15, 3 }
   0xc   : > { %p141_p9 = pnand %p308_p7, %p140_p8 }
   0xd   : > { %v169_v0 = vld [vmem:[%s583_s1] sm:$0xff] (!%p141_p9)  ;;  %v445_v1 = vmov (!%p141_p9), 0   ;;  %p164_p10 = scmp.lt.s32.totalorder (!%p141_p9), %s490_s16, 1  ;;  %s161_s6 = sand.u32 (!%p141_p9), 1, %s435_s13  }
   0xe   : > { %144 = sbr.rel (%p141_p9) target bundleno = 169 (0xa9), region = 32  ;;  %380 = vset.pattern.permute.xlu0 (!%p141_p9), %v445_v1  ;;  %v170_v2 = vld [vmem:[%s584_s2] sm:$0xff] (!%p141_p9)  ;;  %s309_s7 = sshll.u32 (!%p141_p9), %s161_s6, 6 }
   0xf   : > { %189 = vperm.xlu0 (!%p141_p9), %380, %v169_v0   ;;  %s318_s8 = sshll.u32 (!%p141_p9), %s490_s16, 10  ;;  %s163_s9 = scalar_lea.vmem (!%p141_p9), [#allocation2], %s309_s7 }
  0x10   : > { %s243_s10 = sshll.u32 (!%p141_p9), %s163_s9, 4  ;;  %s535_s19 = scalar_lea.hbm (!%p141_p9), %s585_s3, %s318_s8  ;;  %s537_s10 = int_to_ptr.vmem [resolvable:$true] %s243_s10 }
  0x11   : > { %s381_s20 = scalar_lea.vmem (!%p141_p9), %s537_s10, 1024  ;;  %s446_s24 = smov (!%p141_p9), [#allocation2]  }
  0x12   : > { %p382_p11 = scmp.ne.s32.totalorder (!%p141_p9), %s537_s10, %s381_s20  ;;  %s385_s25 = sshll.u32 (!%p141_p9), %s446_s24, 4  ;;  %s386_s25 = int_to_ptr.vmem [resolvable:$false] %s385_s25 }
  0x13   : > { %202 = vperm.xlu0 (!%p141_p9), %380, %v170_v2   ;;  %s387_s26 = scalar_lea.vmem (!%p141_p9), %s386_s25, 2048  ;;  %p388_p0 = scmp.lt.s32.totalorder (!%p141_p9), %s537_s10, %s386_s25 }
  0x14   : > { %p383_p12 = pnand (!%p141_p9), %p382_p11, %p507_p5  ;;  %p389_p1 = scmp.lt.s32.totalorder (!%p141_p9), %s387_s26, %s381_s20 }
  0x15   : > { %s165_s28 = scalar_select %p164_p10, %s490_s16, 1 }
  0x16   : > { %s541_s16 = scalar_lea.sflag [#allocation3], %s161_s6  ;;  %p384_p13 = pneg %p383_p12 }
  0x17   : > { %s317_s29 = sshll.u32 %s165_s28, 5  ;;  %p390_p2 = por %p389_p1, %p388_p0 }
  0x18   : > { %s168_s5 = scalar_lea.vmem %s582_s0, %s317_s29 }
  0x19   : > { %v320_v3 = vld [vmem:[%s168_s5] sm:$0xff]   ;;  %v335_v4 = vld [vmem:[%s168_s5 + $0x8] sm:$0xff]   ;;  %v336_v5 = vld [vmem:[%s168_s5 + $0x10] sm:$0xff]   ;;  %p391_p3 = pnand %p390_p2, %p384_p13 }
  0x1a   : > { %v337_v6 = vld [vmem:[%s168_s5 + $0x18] sm:$0xff]   ;;  %v321_v7 = vunpack.c.l.bf16 %v320_v3  ;;  %v322_v8 = vunpack.c.h.bf16 %v320_v3  ;;  %v325_v9 = vunpack.c.l.bf16 %v335_v4  ;;  %v326_v10 = vunpack.c.h.bf16 %v335_v4 }
  0x1b   : > { %v329_v12 = vunpack.c.l.bf16 %v336_v5  ;;  %v330_v13 = vunpack.c.h.bf16 %v336_v5  ;;  %v333_v14 = vunpack.c.l.bf16 %v337_v6  ;;  %v334_v15 = vunpack.c.h.bf16 %v337_v6 }
  0x8e   : > { %v190_v11 = vpop.permute.xlu0 %189 }
  0x8f   : > { %v192_v16 = vmul.f32 %v321_v7, %v190_v11  ;;  %v193_v17 = vmul.f32 %v322_v8, %v190_v11  ;;  %v194_v18 = vmul.f32 %v325_v9, %v190_v11  ;;  %v195_v19 = vmul.f32 %v326_v10, %v190_v11 }
  0x90   : > { %v196_v21 = vmul.f32 %v329_v12, %v190_v11  ;;  %v197_v22 = vmul.f32 %v330_v13, %v190_v11  ;;  %v198_v23 = vmul.f32 %v333_v14, %v190_v11  ;;  %v199_v24 = vmul.f32 %v334_v15, %v190_v11 }
  0x92   : > { %v203_v20 = vpop.permute.xlu0 %202 }
  0x93   : > { %v205_v25 = vadd.f32 %v203_v20, %v192_v16  ;;  %v206_v26 = vadd.f32 %v203_v20, %v193_v17  ;;  %v207_v27 = vadd.f32 %v203_v20, %v194_v18  ;;  %v208_v28 = vadd.f32 %v203_v20, %v195_v19 }
  0x94   : > { %v209_v29 = vadd.f32 %v203_v20, %v196_v21  ;;  %v210_v30 = vadd.f32 %v203_v20, %v197_v22  ;;  %v211_v31 = vadd.f32 %v203_v20, %v198_v23  ;;  %v212_v32 = vadd.f32 %v203_v20, %v199_v24 }
  0x95   : > { %v213_v33 = vmax.f32 %v205_v25, 0.0  ;;  %v214_v34 = vmax.f32 %v206_v26, 0.0  ;;  %v215_v35 = vmax.f32 %v207_v27, 0.0  ;;  %v216_v36 = vmax.f32 %v208_v28, 0.0 }
  0x96   : > { %v217_v37 = vmax.f32 %v209_v29, 0.0  ;;  %v218_v38 = vmax.f32 %v210_v30, 0.0  ;;  %v219_v39 = vmax.f32 %v211_v31, 0.0  ;;  %v220_v40 = vmax.f32 %v212_v32, 0.0 }
  0x97   : > { %221 = vst [vmem:[%s163_s9] sm:$0xff] %v213_v33  ;;  %222 = vst [vmem:[%s163_s9 + $0x8] sm:$0xff] %v214_v34 }
  0x98   : > { %223 = vst [vmem:[%s163_s9 + $0x10] sm:$0xff] %v215_v35  ;;  %224 = vst [vmem:[%s163_s9 + $0x18] sm:$0xff] %v216_v36 }
  0x99   : > { %225 = vst [vmem:[%s163_s9 + $0x20] sm:$0xff] %v217_v37  ;;  %226 = vst [vmem:[%s163_s9 + $0x28] sm:$0xff] %v218_v38 }
  0x9a   : > { %227 = vst [vmem:[%s163_s9 + $0x30] sm:$0xff] %v219_v39  ;;  %228 = vst [vmem:[%s163_s9 + $0x38] sm:$0xff] %v220_v40 }
  0x9b   : > { %394 = shalt.err (!%p391_p3)
}
  0x9c   : > { %s395_s27 = scalar_lea.hbm %s535_s19, 1024  ;;  %s399_s30 = scalar_lea.hbm %s585_s3, 2048 }
  0x9d   : > { %p396_p4 = scmp.ne.s32.totalorder %s535_s19, %s395_s27  ;;  %p400_p9 = scmp.lt.u32.totalorder %s535_s19, %s585_s3 }
  0x9e   : > { %p401_p10 = scmp.lt.u32.totalorder %s399_s30, %s395_s27  ;;  %p403_p12 = scmp.lt.u32.totalorder %s395_s27, %s535_s19 }
  0x9f   : > { %p397_p7 = pnand %p396_p4, %p507_p5 }
  0xa0   : > { %p402_p11 = por %p401_p10, %p400_p9 }
  0xa1   : > { %p398_p8 = pneg %p397_p7 }
  0xa2   : > { %p404_p13 = por %p403_p12, %p402_p11 }
  0xa4   : > { %p405_p0 = pnand %p404_p13, %p398_p8 }
  0xa6   : > { %408 = shalt.err (!%p405_p0)
}
  0xa7   : > { %s447_s6 = smov 128   ;;  %s448_s7 = smov 8  }
  0xa8   : > { %338 = dma.vmem_to_hbm [thread:$0]  (%p507_p5), %s537_s10, 1024, %s535_s19, %s541_s16, %s447_s6, %s447_s6, %s448_s7  }
  0xa9 PF: > { %p344_p1 = scmp.ge.s32.totalorder %s443_s15, 2  ;;  %s258_s8 = sand.u32 1, %s431_s12  }
  0xaa   : > { %s259_s9 = scalar_lea.sflag [#allocation3], %s258_s8 }
  0xab   : > { %p341_p2 = pnand %p344_p1, %p511_p6 }
  0xad   : > { %426 = dma.done.wait (!%p341_p2), %s259_s9, 1024  }
  0xae   : > { %428 = vsyncadd (!%p341_p2), %s259_s9, 4294966272  ;;  %p13_p3 = scmp.ge.s32.totalorder %s494_s18, 4   ;;  %s588_s12 = smov %s435_s13 }
  0xaf   : > { %s589_s13 = smov %s439_s14  ;;  %s590_s14 = smov %s505_s21 }
  0xb0   : > { %s591_s15 = smov %s494_s18  ;;  %15 = sbr.rel (!%p13_p3) target bundleno = 3 (0x3), region = 67 }
  0xb7   :  { %264 = vsyncpa [#allocation3], 1 }
  0xb8   :  { %266 = vsyncpa [#allocation3 + $0x1], 1 }

// kernel: convlstm_spherical_cheb_bn_pool_concat.6
= control target key start
LH: loop header
LB: loop body
LE: loop exit
PB: predicated region body
PF: predicated region fallthrough
CT: control target
= control target key end

     0   :  { %s1105_s18 = smov 0   ;;  %s1107_s19 = smov 0   ;;  %s1288_s0 = inlined_call_operand.vmem [shape: f32[8,32,256], index: 0, kind: input, shape index: {}]   ;;  %s1289_s1 = inlined_call_operand.vmem [shape: bf16[128,128], index: 1, kind: input, shape index: {}]   ;;  %s1290_s2 = inlined_call_operand.vmem [shape: bf16[32,24], index: 2, kind: input, shape index: {}]   ;;  %s1291_s3 = inlined_call_operand.vmem [shape: f32[32,1], index: 3, kind: input, shape index: {}]   ;;  %s1292_s4 = inlined_call_operand.vmem [shape: bf16[2,8,8,128], index: 4, kind: output, shape index: {0}]   ;;  %s1293_s5 = inlined_call_operand.vmem [shape: f32[16,1], index: 5, kind: output, shape index: {1}]  }
   0x1   :  { %s1109_s20 = smov 0  }
   0x2 LB: > { %s1116_s21 = sadd.s32 4294967295, %s1069_s20   ;;  %s1118_s22 = sadd.s32 1, %s1069_s20   ;;  %s1069_s20 = sphi %s1109_s20, %s1297_s20   ;;  %s1065_s19 = sphi %s1107_s19, %s1296_s19   ;;  %s1061_s18 = sphi %s1105_s18, %s1295_s18  }
   0x3   : > { %s109_s23 = ssub.s32 %s1069_s20, %s1118_s22  ;;  %s112_s24 = sadd.s32 1, %s1065_s19 }
   0x4   : > { %p110_p0 = scmp.eq.s32.totalorder %s109_s23, 0  ;;  %p122_p1 = scmp.ne.s32.totalorder %s1065_s19, %s1061_s18 }
   0x5   : > { %p123_p2 = scmp.eq.s32.totalorder %s1116_s21, 7  ;;  %p811_p3 = scmp.ge.s32.totalorder %s1069_s20, 1 }
   0x6   : > { %s1125_s25 = scalar_select %p110_p0, %s1065_s19, %s112_s24  }
   0x7   : > { %p1127_p4 = por %p123_p2, %p122_p1  ;;  %p185_p5 = scmp.lt.s32.totalorder %s1069_s20, 9 }
   0x9   : > { %p186_p6 = pnand %p811_p3, %p185_p5 }
   0xa   : > { %s207_s27 = sand.u32 (!%p186_p6), 1, %s1061_s18   ;;  %p212_p7 = scmp.lt.s32.totalorder (!%p186_p6), %s1116_s21, 7 }
   0xb   : > { %189 = sbr.rel (%p186_p6) target bundleno = 963 (0x3c3), region = 36  ;;  %s812_s28 = sshll.u32 (!%p186_p6), %s207_s27, 3 }
   0xc   : > { %s1138_s9 = scalar_lea.vmem (!%p186_p6), [#allocation6], %s812_s28  ;;  %p815_p8 = scmp.ne.s32.totalorder (!%p186_p6), %s1116_s21, 0 }
  0x12   : > { %s213_s29 = scalar_select %p212_p7, %s1116_s21, 7 }
  0x13   : > { %221 = sbr.rel (%p815_p8) target bundleno = 26 (0x1a), region = 40  ;;  %vm226_vm0 = vcmask (!%p815_p8), 7168   ;;  %v1071_v0 = vmov (!%p815_p8), 0.0  }
  0x14   : > { %s846_s30 = sshll.u32 %s213_s29, 6  ;;  %222 = vst [vmem:[#allocation2] sm:$0xff] (!%p815_p8), %v1071_v0  ;;  %223 = vst [vmem:[#allocation2 + $0x8] sm:$0xff] (!%p815_p8), %v1071_v0 }
  0x15   : > { %s1136_s8 = scalar_lea.vmem %s1288_s0, %s846_s30  ;;  %224 = vst [vmem:[#allocation3] sm:$0xff] (!%p815_p8), %v1071_v0  ;;  %225 = vst [vmem:[#allocation3 + $0x8] sm:$0xff] (!%p815_p8), %v1071_v0 }
  0x16   : > { %227 = vst.msk [vmem:[#allocation4] sm:$0xff] (!%p815_p8), %vm226_vm0, %v1071_v0  ;;  %228 = vst.msk [vmem:[#allocation4 + $0x8] sm:$0xff] (!%p815_p8), %vm226_vm0, %v1071_v0 }
  0x1a PF: > { %v1144_v1 = vld [vmem:[%s1289_s1] sm:$0xff]   ;;  %v1072_v2 = vmov 0.0   ;;  %v1152_v3 = vld [vmem:[%s1289_s1 + $0x8] sm:$0xff]   ;;  %vm1073_vm1 = vmmov 0   ;;  %v1165_v4 = vld [vmem:[%s1289_s1 + $0x10] sm:$0xff]   ;;  %v1074_v28 = vmov 0  }
  0x1b   : > { %889 = vmatprep.subr.bf16.mxu0 %v1072_v2  ;;  %909 = vmatprep.subr.bf16.mxu1 %v1072_v2  ;;  %v1169_v5 = vld [vmem:[#allocation2] sm:$0xff]  ;;  %v1171_v6 = vld [vmem:[#allocation2 + $0x8] sm:$0xff]  ;;  %v1006_v8 = vld [vmem:[%s1289_s1 + $0x18] sm:$0xff]   ;;  %vm525_vm2 = vcmask 1043456   ;;  %vm518_vm3 = vcmask 195584   ;;  %vm683_vm4 = vcmask 7168  }
  0x1c   : > { %890 = vmatpush3.bf16.msra.mxu0 %v1144_v1  ;;  %905 = vmatprep.mubr.msk.bf16.mxu0 %vm1073_vm1, %v1072_v2  ;;  %v1176_v7 = vpack.c.bf16 %v1171_v6, %v1169_v5  ;;  %v1007_v9 = vld [vmem:[%s1289_s1 + $0x20] sm:$0xff]   ;;  %v1008_v10 = vld [vmem:[%s1289_s1 + $0x28] sm:$0xff]   ;;  %v1009_v11 = vld [vmem:[%s1289_s1 + $0x30] sm:$0xff]   ;;  %p841_p9 = scmp.ne.s32.totalorder %s1116_s21, 7 }
  0x1d   : > { %891 = vmatprep.subr.bf16.mxu0 %v1072_v2  ;;  %910 = vmatpush3.bf16.msra.mxu1 %v1144_v1  ;;  %v1010_v12 = vld [vmem:[%s1289_s1 + $0x38] sm:$0xff]   ;;  %v585_v29 = vld [vmem:[%s1291_s3] sm:$0xff]  ;;  %v587_v30 = vld [vmem:[%s1291_s3 + $0x10] sm:$0xff] }
  0x1e   : > { %911 = vmatprep.subr.bf16.mxu1 %v1072_v2  ;;  %925 = vmatprep.mubr.msk.bf16.mxu1 %vm1073_vm1, %v1072_v2  ;;  %255 = vst [vmem:[#allocation5] sm:$0xff] %v1176_v7  ;;  %v586_v31 = vld [vmem:[%s1291_s3 + $0x8] sm:$0xff]  ;;  %v588_v32 = vld [vmem:[%s1291_s3 + $0x18] sm:$0xff]  ;;  %v1013_v51 = vld [vmem:[%s1290_s2] sm:$0xff]  }
  0x1f   : > { %1001 = vset.pattern.permute.xlu0 %v1074_v28  ;;  %1002 = vset.pattern.permute.xlu1 %v1074_v28  ;;  %v1014_v52 = vld [vmem:[%s1290_s2 + $0x8] sm:$0xff]   ;;  %v485_v54 = vld [vmem:[%s1136_s8] sm:$0xff]  ;;  %v487_v57 = vld [vmem:[%s1136_s8 + $0x10] sm:$0xff] }
  0x20   : > { %892 = vmatpush3.bf16.msra.mxu0 %v1152_v3  ;;  %591 = vperm.xlu0 %1001, %v585_v29   ;;  %v486_v55 = vld [vmem:[%s1136_s8 + $0x8] sm:$0xff]  ;;  %v488_v61 = vld [vmem:[%s1136_s8 + $0x18] sm:$0xff]  ;;  %v489_v62 = vld [vmem:[%s1136_s8 + $0x20] sm:$0xff] }
  0x21   : > { %893 = vmatprep.subr.bf16.mxu0 %v1072_v2  ;;  %912 = vmatpush3.bf16.msra.mxu1 %v1152_v3 }
  0x22   : > { %913 = vmatprep.subr.bf16.mxu1 %v1072_v2  ;;  %601 = vperm.xlu1 %1002, %v587_v30  }
  0x24   : > { %894 = vmatpush3.bf16.msra.mxu0 %v1165_v4  ;;  %596 = vperm.xlu0 %1001, %v586_v31  }
  0x25   : > { %895 = vmatprep.subr.bf16.mxu0 %v1072_v2  ;;  %914 = vmatpush3.bf16.msra.mxu1 %v1165_v4  ;;  %v256_v13 = vld [vmem:[#allocation5] sm:$0xf]  ;;  %v391_v14 = vld [vmem:[#allocation5 + $0x4] sm:$0xf] }
  0x26   : > { %915 = vmatprep.subr.bf16.mxu1 %v1072_v2  ;;  %606 = vperm.xlu1 %1002, %v588_v32  }
  0x28   : > { %896 = vmatpush3.bf16.msra.mxu0 %v1006_v8 }
  0x29   : > { %897 = vmatprep.subr.bf16.mxu0 %v1072_v2  ;;  %916 = vmatpush3.bf16.msra.mxu1 %v1006_v8 }
  0x2a   : > { %917 = vmatprep.subr.bf16.mxu1 %v1072_v2 }
  0x2c   : > { %898 = vmatpush3.bf16.msra.mxu0 %v1007_v9 }
  0x2d   : > { %899 = vmatprep.subr.bf16.mxu0 %v1072_v2  ;;  %918 = vmatpush3.bf16.msra.mxu1 %v1007_v9 }
  0x2e   : > { %919 = vmatprep.subr.bf16.mxu1 %v1072_v2 }
  0x30   : > { %900 = vmatpush3.bf16.msra.mxu0 %v1008_v10 }
  0x31   : > { %901 = vmatprep.subr.bf16.mxu0 %v1072_v2  ;;  %920 = vmatpush3.bf16.msra.mxu1 %v1008_v10 }
  0x32   : > { %921 = vmatprep.subr.bf16.mxu1 %v1072_v2 }
  0x34   : > { %902 = vmatpush3.bf16.msra.mxu0 %v1009_v11 }
  0x35   : > { %903 = vmatprep.subr.bf16.mxu0 %v1072_v2  ;;  %922 = vmatpush3.bf16.msra.mxu1 %v1009_v11 }
  0x36   : > { %923 = vmatprep.subr.bf16.mxu1 %v1072_v2 }
  0x38   : > { %904 = vmatpush3.bf16.msra.mxu0 %v1010_v12 }
  0x39   : > { %929 = vmatprep.subr.bf16.mxu0 %v1072_v2  ;;  %924 = vmatpush3.bf16.msra.mxu1 %v1010_v12 }
  0x3a   : > { %949 = vmatprep.subr.bf16.mxu1 %v1072_v2 }
  0x3b   : > { %906 = vmatmul.mubr.bf16.vlgmr.msra.gmra.mrb[0].mxu0 %v256_v13 }
  0x3c   : > { %930 = vmatpush3.bf16.msra.mxu0 %v1144_v1  ;;  %945 = vmatprep.mubr.msk.bf16.mxu0 %vm1073_vm1, %v1072_v2 }
  0x3d   : > { %931 = vmatprep.subr.bf16.mxu0 %v1072_v2 }
  0x40   : > { %932 = vmatpush3.bf16.msra.mxu0 %v1152_v3 }
  0x41   : > { %933 = vmatprep.subr.bf16.mxu0 %v1072_v2 }
  0x44   : > { %934 = vmatpush3.bf16.msra.mxu0 %v1165_v4 }
  0x45   : > { %935 = vmatprep.subr.bf16.mxu0 %v1072_v2 }
  0x48   : > { %936 = vmatpush3.bf16.msra.mxu0 %v1006_v8 }
  0x49   : > { %937 = vmatprep.subr.bf16.mxu0 %v1072_v2 }
  0x4c   : > { %938 = vmatpush3.bf16.msra.mxu0 %v1007_v9 }
  0x4d   : > { %939 = vmatprep.subr.bf16.mxu0 %v1072_v2 }
  0x50   : > { %940 = vmatpush3.bf16.msra.mxu0 %v1008_v10 }
  0x51   : > { %941 = vmatprep.subr.bf16.mxu0 %v1072_v2 }
  0x54   : > { %942 = vmatpush3.bf16.msra.mxu0 %v1009_v11 }
  0x55   : > { %943 = vmatprep.subr.bf16.mxu0 %v1072_v2 }
  0x58   : > { %944 = vmatpush3.bf16.msra.mxu0 %v1010_v12 }
  0x5b   : > { %946 = vmatmul.mubr.bf16.vlgmr.msra.gmra.mrb[4].mxu0 %v391_v14 }
  0x5c   : > { %564 = vmatprep.mubr.bf16.mxu0 %v1074_v28 }
  0x9f   : > { %v592_v53 = vpop.permute.xlu0 %591 }
  0xa1   : > { %v602_v14 = vpop.permute.xlu1 %601 }
 0x10e   : > { %v339_v15 = vpop.f32.mrb[0].mxu0 }
 0x10f   : > { %v345_v16 = vpack.c.bf16 %v339_v15, %v339_v15  ;;  %v907_v17 = vpop.f32.mrb[1].mxu0 }
 0x110   : > { %v342_v18 = vpop.f32.mrb[2].mxu0 }
 0x111   : > { %346 = vst [vmem:[#allocation5 + $0x8] sm:$0xf] %v345_v16  ;;  %v908_v19 = vpop.f32.mrb[3].mxu0  ;;  %926 = vmatmul.mubr.bf16.vlgmr.msra.gmra.mrb[0].mxu1 %v345_v16 }
 0x112   : > { %950 = vmatpush3.bf16.msra.mxu1 %v1144_v1  ;;  %965 = vmatprep.mubr.msk.bf16.mxu1 %vm1073_vm1, %v1072_v2  ;;  %v491_v19 = vld [vmem:[%s1136_s8 + $0x30] sm:$0xff] }
 0x113   : > { %951 = vmatprep.subr.bf16.mxu1 %v1072_v2 }
 0x116   : > { %952 = vmatpush3.bf16.msra.mxu1 %v1152_v3 }
 0x117   : > { %953 = vmatprep.subr.bf16.mxu1 %v1072_v2 }
 0x11a   : > { %954 = vmatpush3.bf16.msra.mxu1 %v1165_v4 }
 0x11b   : > { %955 = vmatprep.subr.bf16.mxu1 %v1072_v2 }
 0x11e   : > { %956 = vmatpush3.bf16.msra.mxu1 %v1006_v8 }
 0x11f   : > { %957 = vmatprep.subr.bf16.mxu1 %v1072_v2 }
 0x122   : > { %958 = vmatpush3.bf16.msra.mxu1 %v1007_v9  ;;  %v597_v9 = vpop.permute.xlu0 %596 }
 0x123   : > { %959 = vmatprep.subr.bf16.mxu1 %v1072_v2 }
 0x126   : > { %960 = vmatpush3.bf16.msra.mxu1 %v1008_v10 }
 0x127   : > { %961 = vmatprep.subr.bf16.mxu1 %v1072_v2 }
 0x12a   : > { %962 = vmatpush3.bf16.msra.mxu1 %v1009_v11 }
 0x12b   : > { %963 = vmatprep.subr.bf16.mxu1 %v1072_v2  ;;  %v490_v2 = vld [vmem:[%s1136_s8 + $0x28] sm:$0xff] }
 0x12e   : > { %v426_v20 = vpop.f32.mrb[4].mxu0  ;;  %964 = vmatpush3.bf16.msra.mxu1 %v1010_v12 }
 0x12f   : > { %v432_v21 = vpack.c.bf16 %v426_v20, %v426_v20  ;;  %v947_v22 = vpop.f32.mrb[5].mxu0 }
 0x130   : > { %v429_v23 = vpop.f32.mrb[6].mxu0  ;;  %v492_v22 = vld [vmem:[%s1136_s8 + $0x38] sm:$0xff] }
 0x131   : > { %433 = vst [vmem:[#allocation5 + $0xc] sm:$0xf] %v432_v21  ;;  %v948_v24 = vpop.f32.mrb[7].mxu0  ;;  %966 = vmatmul.mubr.bf16.vlgmr.msra.gmra.mrb[4].mxu1 %v432_v21 }
 0x132   : > { %574 = vmatprep.mubr.bf16.mxu1 %v1074_v28 }
 0x138   : > { %v483_v25 = vld [vmem:[#allocation5 + $0x8] sm:$0xff] }
 0x139   : > { %v827_v26 = vcombine.low %v1176_v7, %v483_v25  ;;  %v828_v27 = vcombine.high %v1176_v7, %v483_v25 }
 0x13b   : > { %532 = vmatprep.subr.bf16.mxu0 %v828_v27  ;;  %969 = vmatprep.subr.bf16.mxu1 %v828_v27 }
 0x13c   : > { %533 = vmatpush1.bf16.msra.mxu0 %v827_v26  ;;  %971 = vmatpush1.bf16.msra.mxu1 %v827_v26  ;;  %v607_v26 = vpop.permute.xlu1 %606 }
 0x1e4   : > { %v381_v33 = vpop.f32.mrb[0].mxu1 }
 0x1e5   : > { %v387_v34 = vmul.f32 2.0, %v381_v33  ;;  %v927_v35 = vpop.f32.mrb[1].mxu1 }
 0x1e6   : > { %v384_v36 = vpop.f32.mrb[2].mxu1 }
 0x1e7   : > { %v388_v37 = vsub.f32 %v387_v34, %v1169_v5  ;;  %v928_v38 = vpop.f32.mrb[3].mxu1 }
 0x1e9   : > { %v389_v39 = vpack.c.bf16 %v388_v37, %v388_v37 }
 0x1eb   : > { %390 = vst [vmem:[#allocation5 + $0x10] sm:$0xf] %v389_v39 }
 0x204   : > { %v468_v40 = vpop.f32.mrb[4].mxu1 }
 0x205   : > { %v474_v41 = vmul.f32 2.0, %v468_v40  ;;  %v967_v42 = vpop.f32.mrb[5].mxu1 }
 0x206   : > { %v471_v43 = vpop.f32.mrb[6].mxu1 }
 0x207   : > { %v475_v44 = vsub.f32 %v474_v41, %v1171_v6  ;;  %v968_v45 = vpop.f32.mrb[7].mxu1 }
 0x209   : > { %v476_v46 = vpack.c.bf16 %v475_v44, %v475_v44  ;;  %v655_v44 = vld [vmem:[#allocation3] sm:$0xff] }
 0x20b   : > { %477 = vst [vmem:[#allocation5 + $0x14] sm:$0xf] %v476_v46 }
 0x212   : > { %v484_v47 = vld [vmem:[#allocation5 + $0x10] sm:$0xff] }
 0x213   : > { %v830_v48 = vcombine.high %v484_v47, %v484_v47  ;;  %v829_v49 = vcombine.low %v484_v47, %v484_v47  ;;  %v656_v47 = vld [vmem:[#allocation3 + $0x8] sm:$0xff] }
 0x215   : > { %831 = vmatprep.subr.msk.bf16.mxu0 %vm525_vm2, %v830_v48  ;;  %970 = vmatprep.subr.msk.bf16.mxu1 %vm525_vm2, %v830_v48  ;;  %v527_v50 = vsel %vm525_vm2, %v829_v49, 0 }
 0x216   : > { %535 = vmatpush1.bf16.msra.mxu0 %v527_v50  ;;  %972 = vmatpush1.bf16.msra.mxu1 %v527_v50 }
 0x219   : > { %832 = vmatmul.mubr.msk.bf16.vlgmr.msra.gmra.mrb[8].mxu0 %vm518_vm3, %v1013_v51  ;;  %833 = vmatmul.mubr.msk.bf16.vlgmr.msra.gmra.mrb[8].mxu1 %vm518_vm3, %v1014_v52 }
 0x2ec   : > { %v566_v56 = vpop.f32.mrb[8].mxu0  ;;  %v576_v58 = vpop.f32.mrb[8].mxu1 }
 0x2ed   : > { %v567_v59 = vadd.f32 %v566_v56, %v485_v54  ;;  %v568_v60 = vpop.f32.mrb[9].mxu0  ;;  %v578_v63 = vpop.f32.mrb[9].mxu1  ;;  %v577_v11 = vadd.f32 %v576_v58, %v489_v62 }
 0x2ee   : > { %v569_v0 = vadd.f32 %v568_v60, %v486_v55  ;;  %v570_v1 = vpop.f32.mrb[10].mxu0  ;;  %v580_v3 = vpop.f32.mrb[10].mxu1  ;;  %v579_v15 = vadd.f32 %v578_v63, %v490_v2 }
 0x2ef   : > { %v609_v4 = vadd.f32 %v592_v53, %v567_v59  ;;  %v571_v5 = vadd.f32 %v570_v1, %v487_v57  ;;  %v572_v6 = vpop.f32.mrb[11].mxu0  ;;  %v582_v7 = vpop.f32.mrb[11].mxu1  ;;  %v613_v21 = vadd.f32 %v602_v14, %v577_v11  ;;  %v581_v24 = vadd.f32 %v580_v3, %v491_v19 }
 0x2f0   : > { %v610_v8 = vadd.f32 %v592_v53, %v569_v0  ;;  %v573_v10 = vadd.f32 %v572_v6, %v488_v61  ;;  %v614_v23 = vadd.f32 %v602_v14, %v579_v15  ;;  %v583_v25 = vadd.f32 %v582_v7, %v492_v22  ;;  %v672_v6 = vld [vmem:[#allocation4 + $0x8] sm:$0xff] }
 0x2f1   : > { %v834_v12 = vmul.f32 -1.442695, %v609_v4  ;;  %v611_v13 = vadd.f32 %v597_v9, %v571_v5  ;;  %v838_v27 = vmul.f32 -1.442695, %v613_v21  ;;  %v615_v29 = vadd.f32 %v607_v26, %v581_v24  ;;  %v671_v4 = vld [vmem:[#allocation4] sm:$0xff] }
 0x2f2   : > { %v835_v16 = vmul.f32 -1.442695, %v610_v8  ;;  %v612_v17 = vadd.f32 %v597_v9, %v573_v10  ;;  %v839_v28 = vmul.f32 -1.442695, %v614_v23  ;;  %v616_v30 = vadd.f32 %v607_v26, %v583_v25 }
 0x2f3   : > { %1015 = vpow2.f32 %v834_v12  ;;  %v836_v18 = vmul.f32 -1.442695, %v611_v13 }
 0x2f4   : > { %1017 = vpow2.f32 %v835_v16  ;;  %v837_v20 = vmul.f32 -1.442695, %v612_v17 }
 0x2f5   : > { %1019 = vpow2.f32 %v836_v18 }
 0x2f6   : > { %1021 = vpow2.f32 %v837_v20 }
 0x2f7   : > { %1023 = vpow2.f32 %v838_v27 }
 0x2f8   : > { %1025 = vpow2.f32 %v839_v28 }
 0x2f9   : > { %1027 = vtanh.f32 %v615_v29 }
 0x2fa   : > { %1029 = vtanh.f32 %v616_v30 }
 0x2fd   : > { %v1016_v31 = vpop.eup %1015 }
 0x2fe   : > { %v1018_v32 = vpop.eup %1017  ;;  %v635_v33 = vadd.f32 1.0, %v1016_v31 }
 0x2ff   : > { %v1020_v34 = vpop.eup %1019  ;;  %v636_v35 = vadd.f32 1.0, %v1018_v32 }
 0x300   : > { %v1022_v36 = vpop.eup %1021  ;;  %1031 = vrcp.f32 %v635_v33  ;;  %v637_v37 = vadd.f32 1.0, %v1020_v34 }
 0x301   : > { %1033 = vrcp.f32 %v636_v35  ;;  %v638_v38 = vadd.f32 1.0, %v1022_v36  ;;  %v1024_v39 = vpop.eup %1023 }
 0x302   : > { %1035 = vrcp.f32 %v637_v37  ;;  %v1026_v40 = vpop.eup %1025  ;;  %v639_v46 = vadd.f32 1.0, %v1024_v39 }
 0x303   : > { %1037 = vrcp.f32 %v638_v38  ;;  %v1028_v41 = vpop.eup %1027  ;;  %v640_v50 = vadd.f32 1.0, %v1026_v40 }
 0x304   : > { %v1030_v42 = vpop.eup %1029  ;;  %1039 = vrcp.f32 %v639_v46 }
 0x305   : > { %1041 = vrcp.f32 %v640_v50 }
 0x30a   : > { %v1032_v43 = vpop.eup %1031 }
 0x30b   : > { %v1034_v45 = vpop.eup %1033  ;;  %v659_v48 = vmul.f32 %v1032_v43, %v1028_v41 }
 0x30c   : > { %v1036_v49 = vpop.eup %1035  ;;  %v660_v51 = vmul.f32 %v1034_v45, %v1030_v42 }
 0x30d   : > { %v1038_v52 = vpop.eup %1037  ;;  %v657_v53 = vmul.f32 %v1036_v49, %v655_v44 }
 0x30e   : > { %v658_v54 = vmul.f32 %v1038_v52, %v656_v47  ;;  %v1040_v57 = vpop.eup %1039 }
 0x30f   : > { %v661_v55 = vadd.f32 %v659_v48, %v657_v53  ;;  %v1042_v58 = vpop.eup %1041 }
 0x310   : > { %v662_v56 = vadd.f32 %v660_v51, %v658_v54 }
 0x311   : > { %1043 = vtanh.f32 %v661_v55  ;;  %667 = vst [vmem:[#allocation3] sm:$0xff] %v661_v55 }
 0x312   : > { %1045 = vtanh.f32 %v662_v56  ;;  %668 = vst [vmem:[#allocation3 + $0x8] sm:$0xff] %v662_v56 }
 0x31b   : > { %v1044_v59 = vpop.eup %1043 }
 0x31c   : > { %v1046_v60 = vpop.eup %1045  ;;  %v665_v61 = vmul.f32 %v1044_v59, %v1040_v57 }
 0x31d   : > { %v666_v62 = vmul.f32 %v1046_v60, %v1042_v58 }
 0x31e   : > { %669 = vst [vmem:[#allocation2] sm:$0xff] %v665_v61  ;;  %v673_v63 = vmul.f32 %v665_v61, %v665_v61 }
 0x31f   : > { %670 = vst [vmem:[#allocation2 + $0x8] sm:$0xff] %v666_v62  ;;  %v675_v0 = vadd.f32 %v666_v62, %v665_v61  ;;  %v851_v1 = vpack.c.bf16 %v666_v62, %v665_v61  ;;  %v674_v2 = vmul.f32 %v666_v62, %v666_v62 }
 0x321   : > { %852 = vst [vmem:[%s1138_s9] sm:$0xff] %v851_v1   ;;  %676 = vadd.xlane.f32.xlu0 %v675_v0  ;;  %v678_v3 = vadd.f32 %v674_v2, %v673_v63 }
 0x323   : > { %679 = vadd.xlane.f32.xlu1 %v678_v3 }
 0x3ad   : > { %694 = sbr.rel (%p841_p9) target bundleno = 956 (0x3bc), region = 44 }
 0x3ae   : > { %v677_v5 = vpop.xlane.xlu0 %676 }
 0x3af   : > { %v681_v7 = vadd.f32 %v677_v5, %v671_v4 }
 0x3b0   : > { %v680_v8 = vpop.xlane.xlu1 %679 }
 0x3b1   : > { %684 = vst.msk [vmem:[#allocation4] sm:$0xff] %vm683_vm4, %v681_v7  ;;  %v682_v9 = vadd.f32 %v680_v8, %v672_v6 }
 0x3b3   : > { %685 = vst.msk [vmem:[#allocation4 + $0x8] sm:$0xff] %vm683_vm4, %v682_v9 }
 0x3b8   : > { %v695_v10 = vld [vmem:[#allocation4] sm:$0xff] }
 0x3b9   : > { %697 = vst.msk [vmem:[%s1293_s5] sm:$0xff] %vm683_vm4, %v695_v10 }
 0x3ba   : > { %v696_v11 = vld [vmem:[#allocation4 + $0x8] sm:$0xff] }
 0x3bb   : > { %698 = vst.msk [vmem:[%s1293_s5 + $0x8] sm:$0xff] %vm683_vm4, %v696_v11 }
 0x3bc PF: > { %705 = sbr.rel (!%p1127_p4) target bundleno = 963 (0x3c3), region = 48  ;;  %s843_s28 = sshll.u32 (%p1127_p4), %s1116_s21, 2  ;;  %v723_v12 = vld [vmem:[%s1138_s9] sm:$0xf] (%p1127_p4)  ;;  %v725_v13 = vld [vmem:[%s1138_s9 + $0x4] sm:$0xf] (%p1127_p4) }
 0x3bd   : > { %s707_s6 = scalar_lea.vmem (%p1127_p4), %s1292_s4, %s843_s28 }
 0x3be   : > { %724 = vst [vmem:[%s707_s6] sm:$0xf] (%p1127_p4), %v723_v12  ;;  %726 = vst [vmem:[%s707_s6 + $0x20] sm:$0xf] (%p1127_p4), %v725_v13 }
 0x3c3 PF: > { %p13_p10 = scmp.ge.s32.totalorder %s1118_s22, 10   ;;  %s1295_s18 = smov %s1065_s19 }
 0x3c4   : > { %s1296_s19 = smov %s1125_s25  ;;  %s1297_s20 = smov %s1118_s22 }
 0x3c5   :  { %15 = sbr.rel (!%p13_p10) target bundleno = 2 (0x2), region = 124 }

// kernel: convlstm_spherical_cheb_bn_pool_concat.7
= control target key start
LH: loop header
LB: loop body
LE: loop exit
PB: predicated region body
PF: predicated region fallthrough
CT: control target
= control target key end

     0   :  { %s1450_s21 = smov 0   ;;  %s1452_s22 = smov 0   ;;  %s1720_s0 = inlined_call_operand.vmem [shape: bf16[2,8,8,128], index: 0, kind: input, shape index: {}]   ;;  %s1721_s1 = inlined_call_operand.vmem [shape: f32[2,8,4,128], index: 1, kind: input, shape index: {}]   ;;  %s1722_s2 = inlined_call_operand.vmem [shape: f32[8,1], index: 2, kind: input, shape index: {}]   ;;  %s1723_s3 = inlined_call_operand.vmem [shape: f32[8,1], index: 3, kind: input, shape index: {}]   ;;  %s1724_s4 = inlined_call_operand.vmem [shape: bf16[128,128], index: 4, kind: input, shape index: {}]   ;;  %s1725_s5 = inlined_call_operand.vmem [shape: bf16[3,32,12], index: 5, kind: input, shape index: {}]   ;;  %s1726_s6 = inlined_call_operand.vmem [shape: f32[8,32,256], index: 6, kind: output, shape index: {}]  }
   0x1   :  { %s1454_s23 = smov 0  }
   0x2 LB: > { %s1102_s24 = sadd.s32 4294967295, %s1410_s23   ;;  %s1467_s25 = sadd.s32 1, %s1410_s23   ;;  %s1410_s23 = sphi %s1454_s23, %s1730_s23   ;;  %s1406_s22 = sphi %s1452_s22, %s1729_s22   ;;  %s1402_s21 = sphi %s1450_s21, %s1728_s21  }
   0x3   : > { %s20_s26 = ssub.s32 %s1410_s23, %s1467_s25  ;;  %s23_s27 = sadd.s32 1, %s1406_s22 }
   0x4   : > { %p21_p0 = scmp.eq.s32.totalorder %s20_s26, 0  ;;  %p30_p1 = scmp.ne.s32.totalorder %s1406_s22, %s1402_s21 }
   0x5   : > { %p31_p2 = scmp.eq.s32.totalorder %s1410_s23, 0  ;;  %p1105_p4 = scmp.ge.s32.totalorder %s1410_s23, 8 }
   0x6   : > { %s1476_s28 = scalar_select %p21_p0, %s1406_s22, %s23_s27  }
   0x7   : > { %p1478_p3 = por %p31_p2, %p30_p1  ;;  %204 = sbr.rel (%p1105_p4) target bundleno = 28 (0x1c), region = 32 }
   0xe   : > { %207 = sbr.rel (!%p1478_p3) target bundleno = 21 (0x15), region = 36  ;;  %s209_s30 = sand.u32 (%p1478_p3), 1, %s1406_s22  }
   0xf   : > { %s1107_s7 = sshll.u32 (%p1478_p3), %s1410_s23, 2  ;;  %s1106_s8 = sshll.u32 (%p1478_p3), %s209_s30, 3 }
  0x10   : > { %s213_s11 = scalar_lea.vmem (%p1478_p3), %s1720_s0, %s1107_s7  ;;  %s211_s12 = scalar_lea.vmem (%p1478_p3), [#allocation2], %s1106_s8 }
  0x11   : > { %v229_v0 = vld [vmem:[%s213_s11] sm:$0xf] (%p1478_p3) }
  0x12   : > { %v231_v1 = vld [vmem:[%s213_s11 + $0x20] sm:$0xf] (%p1478_p3)  ;;  %230 = vst [vmem:[%s211_s12] sm:$0xf] (%p1478_p3), %v229_v0 }
  0x13   : > { %232 = vst [vmem:[%s211_s12 + $0x4] sm:$0xf] (%p1478_p3), %v231_v1 }
  0x15 PF: > { %259 = sbr.rel (!%p1478_p3) target bundleno = 28 (0x1c), region = 77  ;;  %s261_s13 = sand.u32 (%p1478_p3), 1, %s1406_s22  }
  0x16   : > { %s1109_s14 = sshll.u32 (%p1478_p3), %s1410_s23, 2  ;;  %s1108_s15 = sshll.u32 (%p1478_p3), %s261_s13, 3 }
  0x17   : > { %s265_s18 = scalar_lea.vmem (%p1478_p3), %s1721_s1, %s1109_s14  ;;  %s263_s19 = scalar_lea.vmem (%p1478_p3), [#allocation3], %s1108_s15 }
  0x18   : > { %v281_v2 = vld [vmem:[%s265_s18] sm:$0xf] (%p1478_p3) }
  0x19   : > { %v283_v3 = vld [vmem:[%s265_s18 + $0x20] sm:$0xf] (%p1478_p3)  ;;  %282 = vst [vmem:[%s263_s19] sm:$0xf] (%p1478_p3), %v281_v2 }
  0x1a   : > { %284 = vst [vmem:[%s263_s19 + $0x4] sm:$0xf] (%p1478_p3), %v283_v3 }
  0x1c PF: > { %p1110_p5 = scmp.ge.s32.totalorder %s1410_s23, 1  ;;  %p310_p6 = scmp.lt.s32.totalorder %s1410_s23, 9 }
  0x1e   : > { %p311_p7 = pnand %p1110_p5, %p310_p6 }
  0x1f   : > { %v379_v4 = vld [vmem:[%s1722_s2] sm:$0xff] (!%p311_p7)  ;;  %v1412_v5 = vmov (!%p311_p7), 0   ;;  %v1413_v6 = vmov (!%p311_p7), 0.0   ;;  %v1515_v9 = vld [vmem:[%s1724_s4 + $0x8] sm:$0xff] (!%p311_p7)   ;;  %v1522_v10 = vld [vmem:[%s1724_s4 + $0x10] sm:$0xff] (!%p311_p7)   ;;  %vm1414_vm0 = vmmov (!%p311_p7), 0  }
  0x20   : > { %314 = sbr.rel (%p311_p7) target bundleno = 907 (0x38b), region = 118  ;;  %1373 = vset.pattern.permute.xlu0 (!%p311_p7), %v1412_v5  ;;  %1208 = vmatprep.subr.bf16.mxu0 (!%p311_p7), %v1413_v6  ;;  %v1506_v7 = vld [vmem:[%s1724_s4] sm:$0xff] (!%p311_p7)   ;;  %v1528_v11 = vld [vmem:[%s1724_s4 + $0x18] sm:$0xff] (!%p311_p7)   ;;  %v1545_v13 = vld [vmem:[%s1724_s4 + $0x28] sm:$0xff] (!%p311_p7)   ;;  %s317_s27 = sand.u32 (!%p311_p7), 1, %s1402_s21   ;;  %vm512_vm1 = vcmask (!%p311_p7), 97280  }
  0x21   : > { %399 = vperm.xlu0 (!%p311_p7), %1373, %v379_v4   ;;  %v380_v8 = vld [vmem:[%s1723_s3] sm:$0xff] (!%p311_p7)  ;;  %1209 = vmatpush3.bf16.msra.mxu0 (!%p311_p7), %v1506_v7  ;;  %v1552_v14 = vld [vmem:[%s1724_s4 + $0x30] sm:$0xff] (!%p311_p7)   ;;  %v1559_v15 = vld [vmem:[%s1724_s4 + $0x38] sm:$0xff] (!%p311_p7)   ;;  %s1565_s29 = sshll.u32 (!%p311_p7), %s317_s27, 3  ;;  %vm519_vm2 = vcmask (!%p311_p7), 1045504   ;;  %p357_p8 = scmp.lt.s32.totalorder (!%p311_p7), %s1102_s24, 7 }
  0x22   : > { %1210 = vmatprep.subr.bf16.mxu0 (!%p311_p7), %v1413_v6  ;;  %1224 = vmatprep.mubr.msk.bf16.mxu0 (!%p311_p7), %vm1414_vm0, %v1413_v6  ;;  %v1538_v12 = vld [vmem:[%s1724_s4 + $0x20] sm:$0xff] (!%p311_p7)   ;;  %s319_s30 = scalar_lea.vmem (!%p311_p7), [#allocation2], %s1565_s29  ;;  %s326_s7 = scalar_lea.vmem (!%p311_p7), [#allocation3], %s1565_s29  ;;  %v1626_v31 = vld [vmem:[%s1725_s5 + $0x10] sm:$0xff] (!%p311_p7)   ;;  %v1635_v38 = vld [vmem:[%s1725_s5 + $0x18] sm:$0xff] (!%p311_p7)  }
  0x23   : > { %v395_v16 = vld [vmem:[%s319_s30] sm:$0xff] (!%p311_p7)   ;;  %v1571_v22 = vld [vmem:[%s326_s7] sm:$0xf] (!%p311_p7)  ;;  %v1596_v29 = vld [vmem:[%s326_s7 + $0x4] sm:$0xf] (!%p311_p7)  ;;  %1230 = vmatprep.mubr.msk.bf16.mxu1 (!%p311_p7), %vm512_vm1, %v1626_v31 }
  0x24   : > { %v396_v17 = vunpack.c.l.bf16 (!%p311_p7), %v395_v16  ;;  %v764_v25 = vunpack.c.h.bf16 (!%p311_p7), %v395_v16  ;;  %v1640_v39 = vld [vmem:[%s1725_s5] sm:$0xff] (!%p311_p7)   ;;  %v1385_v41 = vld [vmem:[%s1725_s5 + $0x8] sm:$0xff] (!%p311_p7)  }
  0x25   : > { %405 = vperm.xlu0 (!%p311_p7), %1373, %v380_v8   ;;  %1211 = vmatpush3.bf16.msra.mxu0 (!%p311_p7), %v1515_v9  ;;  %v1386_v47 = vld [vmem:[%s1725_s5 + $0x20] sm:$0xff] (!%p311_p7)   ;;  %v1387_v3 = vld [vmem:[%s1725_s5 + $0x28] sm:$0xff] (!%p311_p7)  }
  0x26   : > { %1212 = vmatprep.subr.bf16.mxu0 (!%p311_p7), %v1413_v6 }
  0x27   : > { %s1732_s24 = smov (!%p357_p8, %s1102_s24), 7 }
  0x28   : > { %s1153_s19 = sshll.u32 %s1732_s24, 6 }
  0x29   : > { %1213 = vmatpush3.bf16.msra.mxu0 %v1522_v10  ;;  %s361_s27 = scalar_lea.vmem %s1726_s6, %s1153_s19 }
  0x2a   : > { %1214 = vmatprep.subr.bf16.mxu0 %v1413_v6 }
  0x2d   : > { %1215 = vmatpush3.bf16.msra.mxu0 %v1528_v11 }
  0x2e   : > { %1216 = vmatprep.subr.bf16.mxu0 %v1413_v6 }
  0x31   : > { %1217 = vmatpush3.bf16.msra.mxu0 %v1538_v12 }
  0x32   : > { %1218 = vmatprep.subr.bf16.mxu0 %v1413_v6 }
  0x35   : > { %1219 = vmatpush3.bf16.msra.mxu0 %v1545_v13 }
  0x36   : > { %1220 = vmatprep.subr.bf16.mxu0 %v1413_v6 }
  0x39   : > { %1221 = vmatpush3.bf16.msra.mxu0 %v1552_v14 }
  0x3a   : > { %1222 = vmatprep.subr.bf16.mxu0 %v1413_v6 }
  0x3d   : > { %1223 = vmatpush3.bf16.msra.mxu0 %v1559_v15 }
  0x3e   : > { %1266 = vmatprep.subr.bf16.mxu0 %v1413_v6 }
  0xa0   : > { %v400_v18 = vpop.permute.xlu0 %399 }
  0xa1   : > { %v402_v19 = vmul.f32 %v400_v18, %v396_v17  ;;  %v765_v26 = vmul.f32 %v764_v25, %v400_v18 }
  0xa4   : > { %v406_v20 = vpop.permute.xlu0 %405 }
  0xa5   : > { %v1568_v21 = vadd.f32 %v406_v20, %v402_v19  ;;  %v1590_v27 = vadd.f32 %v765_v26, %v406_v20 }
  0xa7   : > { %v409_v23 = vmax.f32 %v1568_v21, 0.0  ;;  %v767_v28 = vmax.f32 %v1590_v27, 0.0 }
  0xa9   : > { %v411_v24 = vpack.c.bf16 %v1571_v22, %v409_v23  ;;  %v1602_v30 = vpack.c.bf16 %v1596_v29, %v767_v28 }
  0xab   : > { %1225 = vmatmul.mubr.bf16.vlgmr.msra.gmra.mrb[0].mxu0 %v411_v24  ;;  %v589_v40 = vsel %vm519_vm2, %v411_v24, 0  ;;  %v866_v5 = vsel %vm519_vm2, %v1602_v30, 0 }
  0xac   : > { %1267 = vmatpush3.bf16.msra.mxu0 %v1506_v7  ;;  %1282 = vmatprep.mubr.msk.bf16.mxu0 %vm1414_vm0, %v1413_v6 }
  0xad   : > { %1268 = vmatprep.subr.bf16.mxu0 %v1413_v6 }
  0xb0   : > { %1269 = vmatpush3.bf16.msra.mxu0 %v1515_v9 }
  0xb1   : > { %1270 = vmatprep.subr.bf16.mxu0 %v1413_v6 }
  0xb4   : > { %1271 = vmatpush3.bf16.msra.mxu0 %v1522_v10 }
  0xb5   : > { %1272 = vmatprep.subr.bf16.mxu0 %v1413_v6 }
  0xb8   : > { %1273 = vmatpush3.bf16.msra.mxu0 %v1528_v11 }
  0xb9   : > { %1274 = vmatprep.subr.bf16.mxu0 %v1413_v6 }
  0xbc   : > { %1275 = vmatpush3.bf16.msra.mxu0 %v1538_v12 }
  0xbd   : > { %1276 = vmatprep.subr.bf16.mxu0 %v1413_v6 }
  0xc0   : > { %1277 = vmatpush3.bf16.msra.mxu0 %v1545_v13 }
  0xc1   : > { %1278 = vmatprep.subr.bf16.mxu0 %v1413_v6 }
  0xc4   : > { %1279 = vmatpush3.bf16.msra.mxu0 %v1552_v14 }
  0xc5   : > { %1280 = vmatprep.subr.bf16.mxu0 %v1413_v6 }
  0xc8   : > { %1281 = vmatpush3.bf16.msra.mxu0 %v1559_v15 }
  0xc9   : > { %1298 = vmatprep.subr.bf16.mxu0 %v1413_v6 }
  0xcb   : > { %1283 = vmatmul.mubr.bf16.vlgmr.msra.gmra.mrb[4].mxu0 %v1602_v30 }
  0xcc   : > { %1299 = vmatpush3.bf16.msra.mxu0 %v1506_v7  ;;  %1314 = vmatprep.mubr.msk.bf16.mxu0 %vm1414_vm0, %v1413_v6 }
  0xcd   : > { %1300 = vmatprep.subr.bf16.mxu0 %v1413_v6 }
  0xd0   : > { %1301 = vmatpush3.bf16.msra.mxu0 %v1515_v9 }
  0xd1   : > { %1302 = vmatprep.subr.bf16.mxu0 %v1413_v6 }
  0xd4   : > { %1303 = vmatpush3.bf16.msra.mxu0 %v1522_v10 }
  0xd5   : > { %1304 = vmatprep.subr.bf16.mxu0 %v1413_v6 }
  0xd8   : > { %1305 = vmatpush3.bf16.msra.mxu0 %v1528_v11 }
  0xd9   : > { %1306 = vmatprep.subr.bf16.mxu0 %v1413_v6 }
  0xdc   : > { %1307 = vmatpush3.bf16.msra.mxu0 %v1538_v12 }
  0xdd   : > { %1308 = vmatprep.subr.bf16.mxu0 %v1413_v6 }
  0xe0   : > { %1309 = vmatpush3.bf16.msra.mxu0 %v1545_v13 }
  0xe1   : > { %1310 = vmatprep.subr.bf16.mxu0 %v1413_v6 }
  0xe4   : > { %1311 = vmatpush3.bf16.msra.mxu0 %v1552_v14 }
  0xe5   : > { %1312 = vmatprep.subr.bf16.mxu0 %v1413_v6 }
  0xe8   : > { %1313 = vmatpush3.bf16.msra.mxu0 %v1559_v15 }
 0x17e   : > { %v494_v32 = vpop.f32.mrb[0].mxu0 }
 0x17f   : > { %v1226_v33 = vpop.f32.mrb[1].mxu0 }
 0x180   : > { %v497_v34 = vpop.f32.mrb[2].mxu0 }
 0x181   : > { %v501_v35 = vpack.c.bf16 %v497_v34, %v494_v32  ;;  %v1227_v36 = vpop.f32.mrb[3].mxu0 }
 0x183   : > { %1340 = vmatprep.subr.msk.bf16.mxu1 %vm519_vm2, %v501_v35  ;;  %v521_v37 = vsel %vm519_vm2, %v501_v35, 0 }
 0x184   : > { %1229 = vmatpush3.bf16.msra.mxu1 %v521_v37 }
 0x185   : > { %1341 = vmatprep.subr.msk.bf16.mxu1 %vm519_vm2, %v411_v24 }
 0x187   : > { %1231 = vmatmul.mubr.msk.bf16.vlgmr.msra.gmra.mrb[0].mxu1 %vm512_vm1, %v1635_v38 }
 0x188   : > { %1235 = vmatpush3.bf16.msra.mxu1 %v589_v40  ;;  %1236 = vmatprep.mubr.msk.bf16.mxu1 %vm512_vm1, %v1640_v39 }
 0x189   : > { %1240 = vmatprep.subr.bf16.mxu1 %v1413_v6 }
 0x193   : > { %1237 = vmatmul.mubr.msk.bf16.vlgmr.msra.gmra.mrb[0].mxu1 %vm512_vm1, %v1385_v41 }
 0x194   : > { %1241 = vmatpush3.bf16.msra.mxu1 %v1506_v7  ;;  %1256 = vmatprep.mubr.msk.bf16.mxu1 %vm1414_vm0, %v1413_v6 }
 0x195   : > { %1242 = vmatprep.subr.bf16.mxu1 %v1413_v6 }
 0x198   : > { %1243 = vmatpush3.bf16.msra.mxu1 %v1515_v9 }
 0x199   : > { %1244 = vmatprep.subr.bf16.mxu1 %v1413_v6 }
 0x19c   : > { %1245 = vmatpush3.bf16.msra.mxu1 %v1522_v10 }
 0x19d   : > { %1246 = vmatprep.subr.bf16.mxu1 %v1413_v6 }
 0x19e   : > { %v805_v42 = vpop.f32.mrb[4].mxu0 }
 0x19f   : > { %v1284_v43 = vpop.f32.mrb[5].mxu0 }
 0x1a0   : > { %1247 = vmatpush3.bf16.msra.mxu1 %v1528_v11  ;;  %v808_v44 = vpop.f32.mrb[6].mxu0 }
 0x1a1   : > { %v812_v45 = vpack.c.bf16 %v808_v44, %v805_v42  ;;  %v1285_v46 = vpop.f32.mrb[7].mxu0  ;;  %1248 = vmatprep.subr.bf16.mxu1 %v1413_v6 }
 0x1a3   : > { %1315 = vmatmul.mubr.bf16.vlgmr.msra.gmra.mrb[8].mxu0 %v812_v45  ;;  %v814_v4 = vsel %vm519_vm2, %v812_v45, 0 }
 0x1a4   : > { %1249 = vmatpush3.bf16.msra.mxu1 %v1538_v12 }
 0x1a5   : > { %1250 = vmatprep.subr.bf16.mxu1 %v1413_v6 }
 0x1a8   : > { %1251 = vmatpush3.bf16.msra.mxu1 %v1545_v13 }
 0x1a9   : > { %1252 = vmatprep.subr.bf16.mxu1 %v1413_v6 }
 0x1ac   : > { %1253 = vmatpush3.bf16.msra.mxu1 %v1552_v14 }
 0x1ad   : > { %1254 = vmatprep.subr.bf16.mxu1 %v1413_v6 }
 0x1b0   : > { %1255 = vmatpush3.bf16.msra.mxu1 %v1559_v15 }
 0x1b3   : > { %1257 = vmatmul.mubr.bf16.vlgmr.msra.gmra.mrb[4].mxu1 %v501_v35 }
 0x1b4   : > { %1262 = vmatprep.mubr.msk.bf16.mxu1 %vm512_vm1, %v1386_v47 }
 0x276   : > { %v951_v48 = vpop.f32.mrb[8].mxu0 }
 0x277   : > { %v958_v49 = vmul.f32 2.0, %v951_v48  ;;  %v1316_v50 = vpop.f32.mrb[9].mxu0 }
 0x278   : > { %v954_v51 = vpop.f32.mrb[10].mxu0 }
 0x279   : > { %v959_v52 = vmul.f32 2.0, %v954_v51  ;;  %v1317_v53 = vpop.f32.mrb[11].mxu0  ;;  %v960_v54 = vsub.f32 %v958_v49, %v767_v28 }
 0x27b   : > { %v961_v55 = vsub.f32 %v959_v52, %v1596_v29 }
 0x27d   : > { %v962_v56 = vpack.c.bf16 %v961_v55, %v960_v54 }
 0x27f   : > { %v964_v6 = vsel %vm519_vm2, %v962_v56, 0 }
 0x286   : > { %v674_v57 = vpop.f32.mrb[4].mxu1 }
 0x287   : > { %v681_v58 = vmul.f32 2.0, %v674_v57  ;;  %v1258_v59 = vpop.f32.mrb[5].mxu1 }
 0x288   : > { %v677_v60 = vpop.f32.mrb[6].mxu1 }
 0x289   : > { %v682_v61 = vmul.f32 2.0, %v677_v60  ;;  %v1259_v62 = vpop.f32.mrb[7].mxu1  ;;  %v683_v63 = vsub.f32 %v681_v58, %v409_v23 }
 0x28b   : > { %v684_v0 = vsub.f32 %v682_v61, %v1571_v22 }
 0x28d   : > { %v685_v1 = vpack.c.bf16 %v684_v0, %v683_v63 }
 0x28f   : > { %1342 = vmatprep.subr.msk.bf16.mxu1 %vm519_vm2, %v685_v1  ;;  %v703_v2 = vsel %vm519_vm2, %v685_v1, 0 }
 0x290   : > { %1261 = vmatpush3.bf16.msra.mxu1 %v703_v2 }
 0x291   : > { %1343 = vmatprep.subr.msk.bf16.mxu1 %vm519_vm2, %v812_v45 }
 0x293   : > { %1263 = vmatmul.mubr.msk.bf16.vlgmr.msra.gmra.mrb[0].mxu1 %vm512_vm1, %v1387_v3 }
 0x294   : > { %1287 = vmatpush3.bf16.msra.mxu1 %v814_v4  ;;  %1288 = vmatprep.mubr.msk.bf16.mxu1 %vm512_vm1, %v1626_v31 }
 0x295   : > { %1344 = vmatprep.subr.msk.bf16.mxu1 %vm519_vm2, %v1602_v30 }
 0x29b   : > { %1289 = vmatmul.mubr.msk.bf16.vlgmr.msra.gmra.mrb[8].mxu1 %vm512_vm1, %v1635_v38 }
 0x29c   : > { %1293 = vmatpush3.bf16.msra.mxu1 %v866_v5  ;;  %1294 = vmatprep.mubr.msk.bf16.mxu1 %vm512_vm1, %v1640_v39 }
 0x29d   : > { %1345 = vmatprep.subr.msk.bf16.mxu1 %vm519_vm2, %v962_v56 }
 0x2a7   : > { %1295 = vmatmul.mubr.msk.bf16.vlgmr.msra.gmra.mrb[8].mxu1 %vm512_vm1, %v1385_v41 }
 0x2a8   : > { %1319 = vmatpush3.bf16.msra.mxu1 %v964_v6  ;;  %1320 = vmatprep.mubr.msk.bf16.mxu1 %vm512_vm1, %v1386_v47 }
 0x2b3   : > { %1321 = vmatmul.mubr.msk.bf16.vlgmr.msra.gmra.mrb[8].mxu1 %vm512_vm1, %v1387_v3 }
 0x366   : > { %v1264_v7 = vpop.f32.mrb[0].mxu1 }
 0x367   : > { %760 = vst [vmem:[%s361_s27 + $0x20] sm:$0xff] %v1264_v7  ;;  %v739_v8 = vpop.f32.mrb[1].mxu1 }
 0x368   : > { %758 = vst [vmem:[%s361_s27] sm:$0xff] %v739_v8  ;;  %v1265_v9 = vpop.f32.mrb[2].mxu1 }
 0x369   : > { %761 = vst [vmem:[%s361_s27 + $0x30] sm:$0xff] %v1265_v9  ;;  %v742_v10 = vpop.f32.mrb[3].mxu1 }
 0x36a   : > { %759 = vst [vmem:[%s361_s27 + $0x10] sm:$0xff] %v742_v10 }
 0x386   : > { %v1322_v11 = vpop.f32.mrb[8].mxu1 }
 0x387   : > { %1021 = vst [vmem:[%s361_s27 + $0x28] sm:$0xff] %v1322_v11  ;;  %v1000_v12 = vpop.f32.mrb[9].mxu1 }
 0x388   : > { %1019 = vst [vmem:[%s361_s27 + $0x8] sm:$0xff] %v1000_v12  ;;  %v1323_v13 = vpop.f32.mrb[10].mxu1 }
 0x389   : > { %1022 = vst [vmem:[%s361_s27 + $0x38] sm:$0xff] %v1323_v13  ;;  %v1003_v14 = vpop.f32.mrb[11].mxu1 }
 0x38a   : > { %1020 = vst [vmem:[%s361_s27 + $0x18] sm:$0xff] %v1003_v14 }
 0x38b PF: > { %p13_p9 = scmp.ge.s32.totalorder %s1467_s25, 10   ;;  %s1728_s21 = smov %s1406_s22 }
 0x38c   : > { %s1729_s22 = smov %s1476_s28  ;;  %s1730_s23 = smov %s1467_s25 }
 0x38d   :  { %15 = sbr.rel (!%p13_p9) target bundleno = 2 (0x2), region = 173 }

</bundles_post_ra>
